<compile_context>
chip_gen: v6e
topology: v6e:2x2x1
jax: 0.10.0
libtpu: 0.0.40
codegen_flags: <defaults>
</compile_context>

<pallas_src>
import math

import jax
import jax.numpy as jnp
from jax import lax
from jax.experimental import pallas as pl
from jax.experimental.pallas import tpu as pltpu

# ----------------------------- configuration --------------------------------
D_MODEL   = 32
NUM_HEADS = 4
D_FF      = 64
NUM_EXP   = 4
EPS       = 1e-9     # DynamicExpansionBlock eps
LN_EPS    = 1e-5     # nn.LayerNorm default eps
BS        = 2
DEC_LEN   = 8
ENC_LEN   = 12
D_K       = D_MODEL // NUM_HEADS


def _ln_rows(v, g, b):
    """Row-major LayerNorm over the last (lane) axis."""
    mu = jnp.mean(v, axis=-1, keepdims=True)
    d = v - mu
    var = jnp.mean(d * d, axis=-1, keepdims=True)
    return d * lax.rsqrt(var + LN_EPS) * g + b


# ------------------------------ Pallas kernel --------------------------------
def decoder_layer_kernel(
    # per-batch data (blocked over grid axis 0)
    x_ref, xt_ref, exp_ref, cross_ref, crosst_ref, mfw_ref, mbw_ref, cm_ref,
    # packed weights (same block every step)
    rowp_ref, debw_ref, debb_ref, kcg_ref, colb_ref, w4_ref, w1_ref, b1_ref, w2_ref,
    # precomputed constants
    repe_ref, repte_ref, reph_ref, foldh_ref, rcm_ref,
    # output
    o_ref,
):
    f32 = jnp.float32
    L, D = DEC_LEN, D_MODEL

    x = x_ref[0]                       # (L, D)
    xT = xt_ref[0]                     # (D, L)
    e3 = exp_ref[0]                    # (3, E*L, D)
    qe_rep = e3[0]                     # (E*L, D)  row e*L+l = qe[e]
    be_rep = e3[1]                     # (E*L, D)
    qe_repT = e3[2]                    # (D, E*L)  col e*L+l = qe[e]
    cross = cross_ref[0]               # (S, D)
    crossT = crosst_ref[0]             # (D, S)
    m_fw = mfw_ref[0]                  # (E*L, L) pre-tiled 0/1 mask
    m_bw = mbw_ref[0]                  # (L, E*L)
    cmr = cm_ref[0]                    # (H*L, S) pre-tiled cross mask

    rowp = rowp_ref[...]               # (10, D) row parameters
    colb = colb_ref[...]               # (3D, 1) column biases

    # ================= DynamicExpansionBlock (pre-norm residual) ================
    x2 = _ln_rows(x, rowp[0:1, :], rowp[1:2, :])
    # fused row-major projection: [cond | key/sqrt(D) | class_a | class_b | selector]
    fused = jnp.dot(x2, debw_ref[...], preferred_element_type=f32) + debb_ref[...]
    cond = fused[:, 0:D]
    x_key = fused[:, D:2 * D]          # already scaled by 1/sqrt(D)
    xa = fused[:, 2 * D:3 * D]
    xb = fused[:, 3 * D:4 * D]
    sel = jax.nn.sigmoid(fused[:, 4 * D:5 * D])

    # column-orientation key / cond projections (LayerNorm-1 folded into weights):
    # avoids any in-kernel transpose of activations.
    mu_c = jnp.mean(xT, axis=0, keepdims=True)                # (1, L)
    xc = xT - mu_c
    var_c = jnp.mean(xc * xc, axis=0, keepdims=True)
    rstd_c = lax.rsqrt(var_c + LN_EPS)                        # (1, L)
    kc = jnp.dot(kcg_ref[...], xc, preferred_element_type=f32)    # (2D, L)
    x_keyT = kc[0:D, :] * rstd_c + colb[0:D, :]               # (D, L), scaled
    condT = kc[D:2 * D, :] * rstd_c + colb[D:2 * D, :]        # (D, L)

    # query / bias expansion rows via replication matmuls (no concatenates)
    cond_rep = jnp.dot(repe_ref[...], cond, preferred_element_type=f32)    # (E*L, D)
    query_exp = cond_rep + qe_rep
    bias_exp = cond_rep + be_rep
    z = jnp.dot(query_exp, x_keyT, preferred_element_type=f32)             # (E*L, L)
    condT_rep = jnp.dot(condT, repte_ref[...], preferred_element_type=f32)  # (D, E*L)
    query_expT = condT_rep + qe_repT
    zT = jnp.dot(x_key, query_expT, preferred_element_type=f32)            # (L, E*L)

    # forward classes (0/1 mask multiply == masked_fill(mask==0, 0))
    a_fw = jnp.maximum(z, 0.0) * m_fw
    b_fw = jnp.maximum(-z, 0.0) * m_fw
    a_fw = a_fw * pl.reciprocal(jnp.sum(a_fw, axis=-1, keepdims=True) + EPS)
    b_fw = b_fw * pl.reciprocal(jnp.sum(b_fw, axis=-1, keepdims=True) + EPS)
    ca_mid = jnp.dot(a_fw, xa, preferred_element_type=f32) + bias_exp       # (E*L, D)
    cb_mid = jnp.dot(b_fw, xb, preferred_element_type=f32) + bias_exp

    # backward classes
    a_bw = jnp.maximum(zT, 0.0) * m_bw
    b_bw = jnp.maximum(-zT, 0.0) * m_bw
    a_bw = a_bw * pl.reciprocal(jnp.sum(a_bw, axis=-1, keepdims=True) + EPS)
    b_bw = b_bw * pl.reciprocal(jnp.sum(b_bw, axis=-1, keepdims=True) + EPS)
    class_a = jnp.dot(a_bw, ca_mid, preferred_element_type=f32)             # (L, D)
    class_b = jnp.dot(b_bw, cb_mid, preferred_element_type=f32)
    x = x + sel * class_a + (1.0 - sel) * class_b

    # ===================== cross Multi-Head Attention ============================
    x2 = _ln_rows(x, rowp[2:3, :], rowp[3:4, :])
    rcm = rcm_ref[...]                                                      # (H*L, D)
    q = jnp.dot(x2, w4_ref[0], preferred_element_type=f32) + rowp[6:7, :]   # scaled q
    qstack = jnp.dot(reph_ref[...], q, preferred_element_type=f32) * rcm    # (H*L, D)
    kT = jnp.dot(w4_ref[3], crossT, preferred_element_type=f32) + colb[2 * D:3 * D, :]
    scores = jnp.dot(qstack, kT, preferred_element_type=f32)                # (H*L, S)
    scores = jnp.where(cmr < 0.5, -10000.0, scores)
    m = jnp.max(scores, axis=-1, keepdims=True)                             # per-head max
    p = jnp.exp(scores - m)
    pn = p * pl.reciprocal(jnp.sum(p, axis=-1, keepdims=True), approx=True)
    v = jnp.dot(cross, w4_ref[1], preferred_element_type=f32) + rowp[7:8, :]
    pv = jnp.dot(pn, v, preferred_element_type=f32) * rcm                   # (H*L, D)
    att = jnp.dot(foldh_ref[...], pv, preferred_element_type=f32)           # (L, D)
    x = x + jnp.dot(att, w4_ref[2], preferred_element_type=f32) + rowp[8:9, :]

    # =============================== FeedForward =================================
    x2 = _ln_rows(x, rowp[4:5, :], rowp[5:6, :])
    hid = jnp.maximum(jnp.dot(x2, w1_ref[...], preferred_element_type=f32) + b1_ref[...], 0.0)
    x = x + jnp.dot(hid, w2_ref[...], preferred_element_type=f32) + rowp[9:10, :]

    o_ref[0] = x


# ------------------------------ packing (once, at init) ----------------------
def pack_params(P):
    D, E, H, L = D_MODEL, NUM_EXP, NUM_HEADS, DEC_LEN
    inv_sd = 1.0 / math.sqrt(D)
    inv_sdk = 1.0 / math.sqrt(D_K)
    g1, b1 = P["ln1_g"], P["ln1_b"]

    # fused row-major DEB projection (1/sqrt(D) folded into key)
    deb_w = jnp.concatenate([P["cond_w"], P["key_w"] * inv_sd, P["ca_w"],
                             P["cb_w"], P["sel_w"]], axis=1)                # (D, 5D)
    deb_b = jnp.concatenate([P["cond_b"], P["key_b"] * inv_sd, P["ca_b"],
                             P["cb_b"], P["sel_b"]], axis=1)                # (1, 5D)
    # transposed-side key / cond projections with LayerNorm-1 folded in
    Kg = (P["key_w"].T * g1) * inv_sd                                       # (D, D)
    Cg = P["cond_w"].T * g1
    kbe = (P["key_w"].T @ b1.T + P["key_b"].T) * inv_sd                     # (D, 1)
    cbe = P["cond_w"].T @ b1.T + P["cond_b"].T
    kcg = jnp.concatenate([Kg, Cg], axis=0)                                 # (2D, D)
    col_b = jnp.concatenate([kbe, cbe, P["bk"].T], axis=0)                  # (3D, 1)
    # MHA weights (1/sqrt(d_k) folded into q); wk kept in PyTorch (out,in) layout
    wq_s = P["wq"] * inv_sdk
    bq_s = P["bq"] * inv_sdk
    w4 = jnp.stack([wq_s, P["wv"], P["wo"], P["wk"].T], axis=0)             # (4, D, D)
    rowp = jnp.concatenate([P["ln1_g"], P["ln1_b"], P["ln2_g"], P["ln2_b"],
                            P["ln3_g"], P["ln3_b"], bq_s, P["bv"], P["bo"],
                            P["b2"]], axis=0)                               # (10, D)
    # constant replication / head-block matrices
    rep_e = jnp.tile(jnp.eye(L, dtype=jnp.float32), (E, 1))                 # (E*L, L)
    rept_e = rep_e.T                                                        # (L, E*L)
    rep_h = jnp.tile(jnp.eye(L, dtype=jnp.float32), (H, 1))                 # (H*L, L)
    fold_h = rep_h.T                                                        # (L, H*L)
    rcm = (jnp.arange(H * L)[:, None] // L
           == jnp.arange(D)[None, :] // D_K).astype(jnp.float32)            # (H*L, D)
    return dict(rowp=rowp, deb_w=deb_w, deb_b=deb_b, kcg=kcg, col_b=col_b, w4=w4,
                w1=P["w1"], b1=P["b1"], w2=P["w2"],
                rep_e=rep_e, rept_e=rept_e, rep_h=rep_h, fold_h=fold_h, rcm=rcm)


# ------------------------------ wrapper ---------------------------------------
@jax.jit
def decoder_layer(x, qexp_g, bexp_g, cross, in_mask, cross_mask, W):
    L, E, H, D = DEC_LEN, NUM_EXP, NUM_HEADS, D_MODEL
    # per-call data-layout glue (cheap XLA ops outside the kernel)
    xT = jnp.swapaxes(x, 1, 2)                                   # (BS, D, L)
    qe_rep = jnp.repeat(qexp_g, L, axis=1)                       # (BS, E*L, D)
    be_rep = jnp.repeat(bexp_g, L, axis=1)
    qe_repT = jnp.swapaxes(qe_rep, 1, 2)                         # (BS, D, E*L)
    exp3 = jnp.stack([qe_rep, be_rep, qe_repT], axis=1)          # (BS, 3, E*L, D)
    crossT = jnp.swapaxes(cross, 1, 2)                           # (BS, D, S)
    m_fw = jnp.tile(in_mask, (1, E, 1))                          # (BS, E*L, L)
    m_bw = jnp.tile(in_mask, (1, 1, E))                          # (BS, L, E*L)
    cmr = jnp.tile(cross_mask, (1, H, 1))                        # (BS, H*L, S)

    def bspec(shape):
        nd = len(shape)
        return pl.BlockSpec((1,) + tuple(shape[1:]),
                            lambda b, _n=nd: (b,) + (0,) * (_n - 1))

    def wspec(shape):
        nd = len(shape)
        return pl.BlockSpec(tuple(shape), lambda b, _n=nd: (0,) * _n)

    data = (x, xT, exp3, cross, crossT, m_fw, m_bw, cmr)
    weights = (W["rowp"], W["deb_w"], W["deb_b"], W["kcg"], W["col_b"], W["w4"],
               W["w1"], W["b1"], W["w2"],
               W["rep_e"], W["rept_e"], W["rep_h"], W["fold_h"], W["rcm"])
    in_specs = [bspec(a.shape) for a in data] + [wspec(a.shape) for a in weights]

    out = pl.pallas_call(
        decoder_layer_kernel,
        grid=(BS,),
        out_shape=jax.ShapeDtypeStruct((BS, L, D), jnp.float32),
        in_specs=in_specs,
        out_specs=pl.BlockSpec((1, L, D), lambda b: (b, 0, 0)),
        compiler_params=pltpu.CompilerParams(dimension_semantics=("parallel",)),
    )(*data, *weights)
    return out


# ----------------------- pure-JAX reference (torch-equivalent) -----------------
def reference(x, qexp_g, bexp_g, cross, in_mask, cross_mask, P):
    bs, L, D = x.shape
    E, H, dk = NUM_EXP, NUM_HEADS, D_K

    def ln(v, g, b):
        mu = v.mean(-1, keepdims=True)
        var = ((v - mu) ** 2).mean(-1, keepdims=True)
        return (v - mu) / jnp.sqrt(var + LN_EPS) * g + b

    def lin(v, w, b):
        return v @ w + b

    # DynamicExpansionBlock
    x2 = ln(x, P["ln1_g"], P["ln1_b"])
    cond = lin(x2, P["cond_w"], P["cond_b"])[:, :, None, :]
    query_exp = (qexp_g[:, None, :, :] + cond).reshape(bs, L * E, D)
    bias_exp = (bexp_g[:, None, :, :] + cond).reshape(bs, L * E, D)
    x_key = lin(x2, P["key_w"], P["key_b"])
    z = jnp.einsum("bnd,bld->bnl", query_exp, x_key) / math.sqrt(D)
    mm1 = jnp.broadcast_to(in_mask[:, :, None, :], (bs, L, E, L)).reshape(bs, L * E, L)
    a_fw = jnp.where(mm1 == 0, 0.0, jax.nn.relu(z))
    b_fw = jnp.where(mm1 == 0, 0.0, jax.nn.relu(-z))
    a_fw = a_fw / (a_fw.sum(-1, keepdims=True) + EPS)
    b_fw = b_fw / (b_fw.sum(-1, keepdims=True) + EPS)
    class_a = a_fw @ lin(x2, P["ca_w"], P["ca_b"])
    class_b = b_fw @ lin(x2, P["cb_w"], P["cb_b"])
    mm2 = jnp.broadcast_to(in_mask[:, :, :, None], (bs, L, L, E)).reshape(bs, L, L * E)
    zt = jnp.swapaxes(z, -1, -2)
    a_bw = jnp.where(mm2 == 0, 0.0, jax.nn.relu(zt))
    b_bw = jnp.where(mm2 == 0, 0.0, jax.nn.relu(-zt))
    a_bw = a_bw / (a_bw.sum(-1, keepdims=True) + EPS)
    b_bw = b_bw / (b_bw.sum(-1, keepdims=True) + EPS)
    class_a = a_bw @ (class_a + bias_exp)
    class_b = b_bw @ (class_b + bias_exp)
    sel = jax.nn.sigmoid(lin(x2, P["sel_w"], P["sel_b"]))
    x = x + sel * class_a + (1 - sel) * class_b

    # MHA (cross attention)
    x2 = ln(x, P["ln2_g"], P["ln2_b"])
    S = cross.shape[1]
    qp = lin(x2, P["wq"], P["bq"]).reshape(bs, L, H, dk).transpose(0, 2, 1, 3)
    kp = lin(cross, P["wk"], P["bk"]).reshape(bs, S, H, dk).transpose(0, 2, 1, 3)
    vp = lin(cross, P["wv"], P["bv"]).reshape(bs, S, H, dk).transpose(0, 2, 1, 3)
    s = jnp.einsum("bhld,bhsd->bhls", qp, kp) / math.sqrt(dk)
    s = jnp.where(cross_mask[:, None] == 0, -10000.0, s)
    p = jax.nn.softmax(s, axis=-1)
    att = jnp.einsum("bhls,bhsd->bhld", p, vp).transpose(0, 2, 1, 3).reshape(bs, L, D)
    x = x + lin(att, P["wo"], P["bo"])

    # FeedForward
    x2 = ln(x, P["ln3_g"], P["ln3_b"])
    x = x + lin(jax.nn.relu(lin(x2, P["w1"], P["b1"])), P["w2"], P["b2"])
    return x


# --------------------------------- main ----------------------------------------
if __name__ == "__main__":
    D, F, E, L, S = D_MODEL, D_FF, NUM_EXP, DEC_LEN, ENC_LEN
    key = jax.random.PRNGKey(0)
    ks = iter(jax.random.split(key, 64))

    def nrm(shape, scale=0.05):
        return scale * jax.random.normal(next(ks), shape, jnp.float32)

    P = {}
    for name in ("ln1", "ln2", "ln3"):
        P[f"{name}_g"] = 1.0 + 0.1 * jax.random.normal(next(ks), (1, D), jnp.float32)
        P[f"{name}_b"] = 0.1 * jax.random.normal(next(ks), (1, D), jnp.float32)
    P["cond_w"], P["cond_b"] = nrm((D, D)), nrm((1, D))
    P["key_w"], P["key_b"] = nrm((D, D)), nrm((1, D))
    P["ca_w"], P["ca_b"] = nrm((D, D)), nrm((1, D))
    P["cb_w"], P["cb_b"] = nrm((D, D)), nrm((1, D))
    P["sel_w"], P["sel_b"] = nrm((D, D)), nrm((1, D))
    P["wq"], P["bq"] = nrm((D, D)), nrm((1, D))
    P["wk"], P["bk"] = nrm((D, D)), nrm((1, D))
    P["wv"], P["bv"] = nrm((D, D)), nrm((1, D))
    P["wo"], P["bo"] = nrm((D, D)), nrm((1, D))
    P["w1"], P["b1"] = nrm((D, F)), nrm((1, F))
    P["w2"], P["b2"] = nrm((F, D)), nrm((1, D))

    q_table = nrm((E, D), scale=0.5)   # nn.Embedding(num_exp, d_model) weights
    b_table = nrm((E, D), scale=0.5)

    # inputs
    x = jax.random.normal(next(ks), (BS, L, D), jnp.float32)
    cross = jax.random.normal(next(ks), (BS, S, D), jnp.float32)
    n_indexes = jnp.broadcast_to(jnp.arange(E, dtype=jnp.int32), (BS, E))
    # embedding lookup is cheap glue done outside the kernel
    qexp_g = q_table[n_indexes]        # (BS, E, D)
    bexp_g = b_table[n_indexes]        # (BS, E, D)
    # causal input attention mask, padded cross attention mask (values 0/1)
    in_mask = jnp.broadcast_to(jnp.tril(jnp.ones((L, L), jnp.float32)), (BS, L, L))
    lengths = jnp.array([S, S - 3], jnp.int32)
    cross_mask = (jnp.arange(S)[None, None, :] < lengths[:, None, None]).astype(jnp.float32)
    cross_mask = jnp.broadcast_to(cross_mask, (BS, L, S))

    # pack weights / constants ONCE (outside the per-call jit path)
    W = pack_params(P)

    out = decoder_layer(x, qexp_g, bexp_g, cross, in_mask, cross_mask, W)
    out = jax.block_until_ready(out)

    ref = reference(x, qexp_g, bexp_g, cross, in_mask, cross_mask, P)
    assert out.shape == (BS, L, D)
    assert jnp.allclose(out, ref, atol=1e-3, rtol=1e-3), (
        float(jnp.max(jnp.abs(out - ref)))
    )
    print("KERNEL_OK")
</pallas_src>

<mosaic_0001>
module attributes {stable_mosaic.version = 11 : i64} {
  func.func @decoder_layer_kernel(%arg0: i32, %arg1: memref<1x8x32xf32, #tpu.memory_space<vmem>>, %arg2: memref<1x32x8xf32, #tpu.memory_space<vmem>>, %arg3: memref<1x3x32x32xf32, #tpu.memory_space<vmem>>, %arg4: memref<1x12x32xf32, #tpu.memory_space<vmem>>, %arg5: memref<1x32x12xf32, #tpu.memory_space<vmem>>, %arg6: memref<1x32x8xf32, #tpu.memory_space<vmem>>, %arg7: memref<1x8x32xf32, #tpu.memory_space<vmem>>, %arg8: memref<1x32x12xf32, #tpu.memory_space<vmem>>, %arg9: memref<10x32xf32, #tpu.memory_space<vmem>>, %arg10: memref<32x160xf32, #tpu.memory_space<vmem>>, %arg11: memref<1x160xf32, #tpu.memory_space<vmem>>, %arg12: memref<64x32xf32, #tpu.memory_space<vmem>>, %arg13: memref<96x1xf32, #tpu.memory_space<vmem>>, %arg14: memref<4x32x32xf32, #tpu.memory_space<vmem>>, %arg15: memref<32x64xf32, #tpu.memory_space<vmem>>, %arg16: memref<1x64xf32, #tpu.memory_space<vmem>>, %arg17: memref<64x32xf32, #tpu.memory_space<vmem>>, %arg18: memref<32x8xf32, #tpu.memory_space<vmem>>, %arg19: memref<8x32xf32, #tpu.memory_space<vmem>>, %arg20: memref<32x8xf32, #tpu.memory_space<vmem>>, %arg21: memref<8x32xf32, #tpu.memory_space<vmem>>, %arg22: memref<32x32xf32, #tpu.memory_space<vmem>>, %arg23: memref<1x8x32xf32, #tpu.memory_space<vmem>>) attributes {dimension_semantics = [#tpu.dimension_semantics<parallel>], iteration_bounds = array<i64: 2>, scalar_prefetch = 0 : i64, scratch_operands = 0 : i64, tpu.core_type = #tpu.core_type<tc>, window_params = [{transform_indices = @transform_0, window_bounds = array<i64: 1, 8, 32>}, {transform_indices = @transform_1, window_bounds = array<i64: 1, 32, 8>}, {transform_indices = @transform_2, window_bounds = array<i64: 1, 3, 32, 32>}, {transform_indices = @transform_3, window_bounds = array<i64: 1, 12, 32>}, {transform_indices = @transform_4, window_bounds = array<i64: 1, 32, 12>}, {transform_indices = @transform_5, window_bounds = array<i64: 1, 32, 8>}, {transform_indices = @transform_6, window_bounds = array<i64: 1, 8, 32>}, {transform_indices = @transform_7, window_bounds = array<i64: 1, 32, 12>}, {pipeline_mode = #tpu.pipeline_mode<synchronous>, transform_indices = @transform_8, window_bounds = array<i64: 10, 32>}, {pipeline_mode = #tpu.pipeline_mode<synchronous>, transform_indices = @transform_9, window_bounds = array<i64: 32, 160>}, {pipeline_mode = #tpu.pipeline_mode<synchronous>, transform_indices = @transform_10, window_bounds = array<i64: 1, 160>}, {pipeline_mode = #tpu.pipeline_mode<synchronous>, transform_indices = @transform_11, window_bounds = array<i64: 64, 32>}, {pipeline_mode = #tpu.pipeline_mode<synchronous>, transform_indices = @transform_12, window_bounds = array<i64: 96, 1>}, {pipeline_mode = #tpu.pipeline_mode<synchronous>, transform_indices = @transform_13, window_bounds = array<i64: 4, 32, 32>}, {pipeline_mode = #tpu.pipeline_mode<synchronous>, transform_indices = @transform_14, window_bounds = array<i64: 32, 64>}, {pipeline_mode = #tpu.pipeline_mode<synchronous>, transform_indices = @transform_15, window_bounds = array<i64: 1, 64>}, {pipeline_mode = #tpu.pipeline_mode<synchronous>, transform_indices = @transform_16, window_bounds = array<i64: 64, 32>}, {pipeline_mode = #tpu.pipeline_mode<synchronous>, transform_indices = @transform_17, window_bounds = array<i64: 32, 8>}, {pipeline_mode = #tpu.pipeline_mode<synchronous>, transform_indices = @transform_18, window_bounds = array<i64: 8, 32>}, {pipeline_mode = #tpu.pipeline_mode<synchronous>, transform_indices = @transform_19, window_bounds = array<i64: 32, 8>}, {pipeline_mode = #tpu.pipeline_mode<synchronous>, transform_indices = @transform_20, window_bounds = array<i64: 8, 32>}, {pipeline_mode = #tpu.pipeline_mode<synchronous>, transform_indices = @transform_21, window_bounds = array<i64: 32, 32>}, {transform_indices = @transform_22, window_bounds = array<i64: 1, 8, 32>}]} {
    %c0 = arith.constant 0 : index
    %c0_0 = arith.constant 0 : index
    %c0_1 = arith.constant 0 : index
    %0 = vector.load %arg1[%c0, %c0_0, %c0_1] : memref<1x8x32xf32, #tpu.memory_space<vmem>>, vector<1x8x32xf32>
    %1 = vector.shape_cast %0 : vector<1x8x32xf32> to vector<8x32xf32>
    %c0_2 = arith.constant 0 : index
    %c0_3 = arith.constant 0 : index
    %c0_4 = arith.constant 0 : index
    %2 = vector.load %arg2[%c0_2, %c0_3, %c0_4] : memref<1x32x8xf32, #tpu.memory_space<vmem>>, vector<1x32x8xf32>
    %3 = vector.shape_cast %2 : vector<1x32x8xf32> to vector<32x8xf32>
    %c0_5 = arith.constant 0 : index
    %c0_6 = arith.constant 0 : index
    %c0_7 = arith.constant 0 : index
    %c0_8 = arith.constant 0 : index
    %4 = vector.load %arg3[%c0_5, %c0_6, %c0_7, %c0_8] : memref<1x3x32x32xf32, #tpu.memory_space<vmem>>, vector<1x3x32x32xf32>
    %5 = vector.shape_cast %4 : vector<1x3x32x32xf32> to vector<3x32x32xf32>
    %6 = vector.extract_strided_slice %5 {offsets = [0, 0, 0], sizes = [1, 32, 32], strides = [1, 1, 1]} : vector<3x32x32xf32> to vector<1x32x32xf32>
    %7 = vector.shape_cast %6 : vector<1x32x32xf32> to vector<32x32xf32>
    %8 = vector.extract_strided_slice %5 {offsets = [1, 0, 0], sizes = [1, 32, 32], strides = [1, 1, 1]} : vector<3x32x32xf32> to vector<1x32x32xf32>
    %9 = vector.shape_cast %8 : vector<1x32x32xf32> to vector<32x32xf32>
    %10 = vector.extract_strided_slice %5 {offsets = [2, 0, 0], sizes = [1, 32, 32], strides = [1, 1, 1]} : vector<3x32x32xf32> to vector<1x32x32xf32>
    %11 = vector.shape_cast %10 : vector<1x32x32xf32> to vector<32x32xf32>
    %c0_9 = arith.constant 0 : index
    %c0_10 = arith.constant 0 : index
    %c0_11 = arith.constant 0 : index
    %12 = vector.load %arg4[%c0_9, %c0_10, %c0_11] : memref<1x12x32xf32, #tpu.memory_space<vmem>>, vector<1x12x32xf32>
    %13 = vector.shape_cast %12 : vector<1x12x32xf32> to vector<12x32xf32>
    %c0_12 = arith.constant 0 : index
    %c0_13 = arith.constant 0 : index
    %c0_14 = arith.constant 0 : index
    %14 = vector.load %arg5[%c0_12, %c0_13, %c0_14] : memref<1x32x12xf32, #tpu.memory_space<vmem>>, vector<1x32x12xf32>
    %15 = vector.shape_cast %14 : vector<1x32x12xf32> to vector<32x12xf32>
    %c0_15 = arith.constant 0 : index
    %c0_16 = arith.constant 0 : index
    %c0_17 = arith.constant 0 : index
    %16 = vector.load %arg6[%c0_15, %c0_16, %c0_17] : memref<1x32x8xf32, #tpu.memory_space<vmem>>, vector<1x32x8xf32>
    %17 = vector.shape_cast %16 : vector<1x32x8xf32> to vector<32x8xf32>
    %c0_18 = arith.constant 0 : index
    %c0_19 = arith.constant 0 : index
    %c0_20 = arith.constant 0 : index
    %18 = vector.load %arg7[%c0_18, %c0_19, %c0_20] : memref<1x8x32xf32, #tpu.memory_space<vmem>>, vector<1x8x32xf32>
    %19 = vector.shape_cast %18 : vector<1x8x32xf32> to vector<8x32xf32>
    %c0_21 = arith.constant 0 : index
    %c0_22 = arith.constant 0 : index
    %c0_23 = arith.constant 0 : index
    %20 = vector.load %arg8[%c0_21, %c0_22, %c0_23] : memref<1x32x12xf32, #tpu.memory_space<vmem>>, vector<1x32x12xf32>
    %21 = vector.shape_cast %20 : vector<1x32x12xf32> to vector<32x12xf32>
    %c0_24 = arith.constant 0 : index
    %c0_25 = arith.constant 0 : index
    %22 = vector.load %arg9[%c0_24, %c0_25] : memref<10x32xf32, #tpu.memory_space<vmem>>, vector<10x32xf32>
    %c0_26 = arith.constant 0 : index
    %c0_27 = arith.constant 0 : index
    %23 = vector.load %arg13[%c0_26, %c0_27] : memref<96x1xf32, #tpu.memory_space<vmem>>, vector<96x1xf32>
    %24 = vector.extract_strided_slice %22 {offsets = [0, 0], sizes = [1, 32], strides = [1, 1]} : vector<10x32xf32> to vector<1x32xf32>
    %25 = vector.extract_strided_slice %22 {offsets = [1, 0], sizes = [1, 32], strides = [1, 1]} : vector<10x32xf32> to vector<1x32xf32>
    %cst = arith.constant dense<0.000000e+00> : vector<8xf32>
    %26 = vector.multi_reduction <add>, %1, %cst [1] : vector<8x32xf32> to vector<8xf32>
    %27 = vector.shape_cast %26 : vector<8xf32> to vector<8x1xf32>
    %cst_28 = arith.constant 3.200000e+01 : f32
    %28 = vector.broadcast %cst_28 : f32 to vector<8x1xf32>
    %29 = arith.divf %27, %28 : vector<8x1xf32>
    %30 = vector.broadcast %29 : vector<8x1xf32> to vector<8x32xf32>
    %31 = arith.subf %1, %30 : vector<8x32xf32>
    %32 = arith.mulf %31, %31 : vector<8x32xf32>
    %cst_29 = arith.constant dense<0.000000e+00> : vector<8xf32>
    %33 = vector.multi_reduction <add>, %32, %cst_29 [1] : vector<8x32xf32> to vector<8xf32>
    %34 = vector.shape_cast %33 : vector<8xf32> to vector<8x1xf32>
    %cst_30 = arith.constant 3.200000e+01 : f32
    %35 = vector.broadcast %cst_30 : f32 to vector<8x1xf32>
    %36 = arith.divf %34, %35 : vector<8x1xf32>
    %cst_31 = arith.constant 9.99999974E-6 : f32
    %37 = vector.broadcast %cst_31 : f32 to vector<8x1xf32>
    %38 = arith.addf %36, %37 : vector<8x1xf32>
    %39 = math.rsqrt %38 : vector<8x1xf32>
    %40 = vector.broadcast %39 : vector<8x1xf32> to vector<8x32xf32>
    %41 = arith.mulf %31, %40 : vector<8x32xf32>
    %42 = vector.broadcast %24 : vector<1x32xf32> to vector<8x32xf32>
    %43 = arith.mulf %41, %42 : vector<8x32xf32>
    %44 = vector.broadcast %25 : vector<1x32xf32> to vector<8x32xf32>
    %45 = arith.addf %43, %44 : vector<8x32xf32>
    %c0_32 = arith.constant 0 : index
    %c0_33 = arith.constant 0 : index
    %46 = vector.load %arg10[%c0_32, %c0_33] : memref<32x160xf32, #tpu.memory_space<vmem>>, vector<32x160xf32>
    %cst_34 = arith.constant dense<0.000000e+00> : vector<8x160xf32>
    %47 = tpu.matmul %45, %46, %cst_34 {dimension_numbers = #tpu.dot_dimension_numbers<[1], [0], [0], [1], [0, 0, 1, 1], [], []>} : vector<8x32xf32>, vector<32x160xf32>, vector<8x160xf32> -> vector<8x160xf32>
    %c0_35 = arith.constant 0 : index
    %c0_36 = arith.constant 0 : index
    %48 = vector.load %arg11[%c0_35, %c0_36] : memref<1x160xf32, #tpu.memory_space<vmem>>, vector<1x160xf32>
    %49 = vector.broadcast %48 : vector<1x160xf32> to vector<8x160xf32>
    %50 = arith.addf %47, %49 : vector<8x160xf32>
    %51 = vector.extract_strided_slice %50 {offsets = [0, 0], sizes = [8, 32], strides = [1, 1]} : vector<8x160xf32> to vector<8x32xf32>
    %52 = vector.extract_strided_slice %50 {offsets = [0, 32], sizes = [8, 32], strides = [1, 1]} : vector<8x160xf32> to vector<8x32xf32>
    %53 = vector.extract_strided_slice %50 {offsets = [0, 64], sizes = [8, 32], strides = [1, 1]} : vector<8x160xf32> to vector<8x32xf32>
    %54 = vector.extract_strided_slice %50 {offsets = [0, 96], sizes = [8, 32], strides = [1, 1]} : vector<8x160xf32> to vector<8x32xf32>
    %55 = vector.extract_strided_slice %50 {offsets = [0, 128], sizes = [8, 32], strides = [1, 1]} : vector<8x160xf32> to vector<8x32xf32>
    %56 = arith.negf %55 : vector<8x32xf32>
    %57 = math.exp %56 : vector<8x32xf32>
    %cst_37 = arith.constant 1.000000e+00 : f32
    %58 = vector.broadcast %cst_37 : f32 to vector<8x32xf32>
    %59 = arith.addf %58, %57 : vector<8x32xf32>
    %60 = arith.divf %58, %59 : vector<8x32xf32>
    %cst_38 = arith.constant dense<0.000000e+00> : vector<8xf32>
    %61 = vector.multi_reduction <add>, %3, %cst_38 [0] : vector<32x8xf32> to vector<8xf32>
    %62 = vector.shape_cast %61 : vector<8xf32> to vector<1x8xf32>
    %cst_39 = arith.constant 3.200000e+01 : f32
    %63 = vector.broadcast %cst_39 : f32 to vector<1x8xf32>
    %64 = arith.divf %62, %63 : vector<1x8xf32>
    %65 = vector.broadcast %64 : vector<1x8xf32> to vector<32x8xf32>
    %66 = arith.subf %3, %65 : vector<32x8xf32>
    %67 = arith.mulf %66, %66 : vector<32x8xf32>
    %cst_40 = arith.constant dense<0.000000e+00> : vector<8xf32>
    %68 = vector.multi_reduction <add>, %67, %cst_40 [0] : vector<32x8xf32> to vector<8xf32>
    %69 = vector.shape_cast %68 : vector<8xf32> to vector<1x8xf32>
    %cst_41 = arith.constant 3.200000e+01 : f32
    %70 = vector.broadcast %cst_41 : f32 to vector<1x8xf32>
    %71 = arith.divf %69, %70 : vector<1x8xf32>
    %cst_42 = arith.constant 9.99999974E-6 : f32
    %72 = vector.broadcast %cst_42 : f32 to vector<1x8xf32>
    %73 = arith.addf %71, %72 : vector<1x8xf32>
    %74 = math.rsqrt %73 : vector<1x8xf32>
    %c0_43 = arith.constant 0 : index
    %c0_44 = arith.constant 0 : index
    %75 = vector.load %arg12[%c0_43, %c0_44] : memref<64x32xf32, #tpu.memory_space<vmem>>, vector<64x32xf32>
    %cst_45 = arith.constant dense<0.000000e+00> : vector<64x8xf32>
    %76 = tpu.matmul %75, %66, %cst_45 {dimension_numbers = #tpu.dot_dimension_numbers<[1], [0], [0], [1], [0, 0, 1, 1], [], []>} : vector<64x32xf32>, vector<32x8xf32>, vector<64x8xf32> -> vector<64x8xf32>
    %77 = vector.extract_strided_slice %76 {offsets = [0, 0], sizes = [32, 8], strides = [1, 1]} : vector<64x8xf32> to vector<32x8xf32>
    %78 = vector.broadcast %74 : vector<1x8xf32> to vector<32x8xf32>
    %79 = arith.mulf %77, %78 : vector<32x8xf32>
    %80 = vector.extract_strided_slice %23 {offsets = [0, 0], sizes = [32, 1], strides = [1, 1]} : vector<96x1xf32> to vector<32x1xf32>
    %81 = vector.broadcast %80 : vector<32x1xf32> to vector<32x8xf32>
    %82 = arith.addf %79, %81 : vector<32x8xf32>
    %83 = vector.extract_strided_slice %76 {offsets = [32, 0], sizes = [32, 8], strides = [1, 1]} : vector<64x8xf32> to vector<32x8xf32>
    %84 = vector.broadcast %74 : vector<1x8xf32> to vector<32x8xf32>
    %85 = arith.mulf %83, %84 : vector<32x8xf32>
    %86 = vector.extract_strided_slice %23 {offsets = [32, 0], sizes = [32, 1], strides = [1, 1]} : vector<96x1xf32> to vector<32x1xf32>
    %87 = vector.broadcast %86 : vector<32x1xf32> to vector<32x8xf32>
    %88 = arith.addf %85, %87 : vector<32x8xf32>
    %c0_46 = arith.constant 0 : index
    %c0_47 = arith.constant 0 : index
    %89 = vector.load %arg18[%c0_46, %c0_47] : memref<32x8xf32, #tpu.memory_space<vmem>>, vector<32x8xf32>
    %cst_48 = arith.constant dense<0.000000e+00> : vector<32x32xf32>
    %90 = tpu.matmul %89, %51, %cst_48 {dimension_numbers = #tpu.dot_dimension_numbers<[1], [0], [0], [1], [0, 0, 1, 1], [], []>} : vector<32x8xf32>, vector<8x32xf32>, vector<32x32xf32> -> vector<32x32xf32>
    %91 = arith.addf %90, %7 : vector<32x32xf32>
    %92 = arith.addf %90, %9 : vector<32x32xf32>
    %cst_49 = arith.constant dense<0.000000e+00> : vector<32x8xf32>
    %93 = tpu.matmul %91, %82, %cst_49 {dimension_numbers = #tpu.dot_dimension_numbers<[1], [0], [0], [1], [0, 0, 1, 1], [], []>} : vector<32x32xf32>, vector<32x8xf32>, vector<32x8xf32> -> vector<32x8xf32>
    %c0_50 = arith.constant 0 : index
    %c0_51 = arith.constant 0 : index
    %94 = vector.load %arg19[%c0_50, %c0_51] : memref<8x32xf32, #tpu.memory_space<vmem>>, vector<8x32xf32>
    %cst_52 = arith.constant dense<0.000000e+00> : vector<32x32xf32>
    %95 = tpu.matmul %88, %94, %cst_52 {dimension_numbers = #tpu.dot_dimension_numbers<[1], [0], [0], [1], [0, 0, 1, 1], [], []>} : vector<32x8xf32>, vector<8x32xf32>, vector<32x32xf32> -> vector<32x32xf32>
    %96 = arith.addf %95, %11 : vector<32x32xf32>
    %cst_53 = arith.constant dense<0.000000e+00> : vector<8x32xf32>
    %97 = tpu.matmul %52, %96, %cst_53 {dimension_numbers = #tpu.dot_dimension_numbers<[1], [0], [0], [1], [0, 0, 1, 1], [], []>} : vector<8x32xf32>, vector<32x32xf32>, vector<8x32xf32> -> vector<8x32xf32>
    %cst_54 = arith.constant 0.000000e+00 : f32
    %98 = vector.broadcast %cst_54 : f32 to vector<32x8xf32>
    %99 = arith.maximumf %93, %98 : vector<32x8xf32>
    %100 = arith.mulf %99, %17 : vector<32x8xf32>
    %cst_55 = arith.constant 0.000000e+00 : f32
    %101 = vector.broadcast %cst_55 : f32 to vector<32x8xf32>
    %102 = arith.subf %101, %93 : vector<32x8xf32>
    %cst_56 = arith.constant 0.000000e+00 : f32
    %103 = vector.broadcast %cst_56 : f32 to vector<32x8xf32>
    %104 = arith.maximumf %102, %103 : vector<32x8xf32>
    %105 = arith.mulf %104, %17 : vector<32x8xf32>
    %cst_57 = arith.constant dense<0.000000e+00> : vector<32xf32>
    %106 = vector.multi_reduction <add>, %100, %cst_57 [1] : vector<32x8xf32> to vector<32xf32>
    %107 = vector.shape_cast %106 : vector<32xf32> to vector<32x1xf32>
    %cst_58 = arith.constant 9.99999971E-10 : f32
    %108 = vector.broadcast %cst_58 : f32 to vector<32x1xf32>
    %109 = arith.addf %107, %108 : vector<32x1xf32>
    %110 = tpu.reciprocal %109 : vector<32x1xf32> -> vector<32x1xf32>
    %111 = vector.broadcast %110 : vector<32x1xf32> to vector<32x8xf32>
    %112 = arith.mulf %100, %111 : vector<32x8xf32>
    %cst_59 = arith.constant dense<0.000000e+00> : vector<32xf32>
    %113 = vector.multi_reduction <add>, %105, %cst_59 [1] : vector<32x8xf32> to vector<32xf32>
    %114 = vector.shape_cast %113 : vector<32xf32> to vector<32x1xf32>
    %cst_60 = arith.constant 9.99999971E-10 : f32
    %115 = vector.broadcast %cst_60 : f32 to vector<32x1xf32>
    %116 = arith.addf %114, %115 : vector<32x1xf32>
    %117 = tpu.reciprocal %116 : vector<32x1xf32> -> vector<32x1xf32>
    %118 = vector.broadcast %117 : vector<32x1xf32> to vector<32x8xf32>
    %119 = arith.mulf %105, %118 : vector<32x8xf32>
    %cst_61 = arith.constant dense<0.000000e+00> : vector<32x32xf32>
    %120 = tpu.matmul %112, %53, %cst_61 {dimension_numbers = #tpu.dot_dimension_numbers<[1], [0], [0], [1], [0, 0, 1, 1], [], []>} : vector<32x8xf32>, vector<8x32xf32>, vector<32x32xf32> -> vector<32x32xf32>
    %121 = arith.addf %120, %92 : vector<32x32xf32>
    %cst_62 = arith.constant dense<0.000000e+00> : vector<32x32xf32>
    %122 = tpu.matmul %119, %54, %cst_62 {dimension_numbers = #tpu.dot_dimension_numbers<[1], [0], [0], [1], [0, 0, 1, 1], [], []>} : vector<32x8xf32>, vector<8x32xf32>, vector<32x32xf32> -> vector<32x32xf32>
    %123 = arith.addf %122, %92 : vector<32x32xf32>
    %cst_63 = arith.constant 0.000000e+00 : f32
    %124 = vector.broadcast %cst_63 : f32 to vector<8x32xf32>
    %125 = arith.maximumf %97, %124 : vector<8x32xf32>
    %126 = arith.mulf %125, %19 : vector<8x32xf32>
    %cst_64 = arith.constant 0.000000e+00 : f32
    %127 = vector.broadcast %cst_64 : f32 to vector<8x32xf32>
    %128 = arith.subf %127, %97 : vector<8x32xf32>
    %cst_65 = arith.constant 0.000000e+00 : f32
    %129 = vector.broadcast %cst_65 : f32 to vector<8x32xf32>
    %130 = arith.maximumf %128, %129 : vector<8x32xf32>
    %131 = arith.mulf %130, %19 : vector<8x32xf32>
    %cst_66 = arith.constant dense<0.000000e+00> : vector<8xf32>
    %132 = vector.multi_reduction <add>, %126, %cst_66 [1] : vector<8x32xf32> to vector<8xf32>
    %133 = vector.shape_cast %132 : vector<8xf32> to vector<8x1xf32>
    %cst_67 = arith.constant 9.99999971E-10 : f32
    %134 = vector.broadcast %cst_67 : f32 to vector<8x1xf32>
    %135 = arith.addf %133, %134 : vector<8x1xf32>
    %136 = tpu.reciprocal %135 : vector<8x1xf32> -> vector<8x1xf32>
    %137 = vector.broadcast %136 : vector<8x1xf32> to vector<8x32xf32>
    %138 = arith.mulf %126, %137 : vector<8x32xf32>
    %cst_68 = arith.constant dense<0.000000e+00> : vector<8xf32>
    %139 = vector.multi_reduction <add>, %131, %cst_68 [1] : vector<8x32xf32> to vector<8xf32>
    %140 = vector.shape_cast %139 : vector<8xf32> to vector<8x1xf32>
    %cst_69 = arith.constant 9.99999971E-10 : f32
    %141 = vector.broadcast %cst_69 : f32 to vector<8x1xf32>
    %142 = arith.addf %140, %141 : vector<8x1xf32>
    %143 = tpu.reciprocal %142 : vector<8x1xf32> -> vector<8x1xf32>
    %144 = vector.broadcast %143 : vector<8x1xf32> to vector<8x32xf32>
    %145 = arith.mulf %131, %144 : vector<8x32xf32>
    %cst_70 = arith.constant dense<0.000000e+00> : vector<8x32xf32>
    %146 = tpu.matmul %138, %121, %cst_70 {dimension_numbers = #tpu.dot_dimension_numbers<[1], [0], [0], [1], [0, 0, 1, 1], [], []>} : vector<8x32xf32>, vector<32x32xf32>, vector<8x32xf32> -> vector<8x32xf32>
    %cst_71 = arith.constant dense<0.000000e+00> : vector<8x32xf32>
    %147 = tpu.matmul %145, %123, %cst_71 {dimension_numbers = #tpu.dot_dimension_numbers<[1], [0], [0], [1], [0, 0, 1, 1], [], []>} : vector<8x32xf32>, vector<32x32xf32>, vector<8x32xf32> -> vector<8x32xf32>
    %148 = arith.mulf %60, %146 : vector<8x32xf32>
    %149 = arith.addf %1, %148 : vector<8x32xf32>
    %cst_72 = arith.constant 1.000000e+00 : f32
    %150 = vector.broadcast %cst_72 : f32 to vector<8x32xf32>
    %151 = arith.subf %150, %60 : vector<8x32xf32>
    %152 = arith.mulf %151, %147 : vector<8x32xf32>
    %153 = arith.addf %149, %152 : vector<8x32xf32>
    %154 = vector.extract_strided_slice %22 {offsets = [2, 0], sizes = [1, 32], strides = [1, 1]} : vector<10x32xf32> to vector<1x32xf32>
    %155 = vector.extract_strided_slice %22 {offsets = [3, 0], sizes = [1, 32], strides = [1, 1]} : vector<10x32xf32> to vector<1x32xf32>
    %cst_73 = arith.constant dense<0.000000e+00> : vector<8xf32>
    %156 = vector.multi_reduction <add>, %153, %cst_73 [1] : vector<8x32xf32> to vector<8xf32>
    %157 = vector.shape_cast %156 : vector<8xf32> to vector<8x1xf32>
    %cst_74 = arith.constant 3.200000e+01 : f32
    %158 = vector.broadcast %cst_74 : f32 to vector<8x1xf32>
    %159 = arith.divf %157, %158 : vector<8x1xf32>
    %160 = vector.broadcast %159 : vector<8x1xf32> to vector<8x32xf32>
    %161 = arith.subf %153, %160 : vector<8x32xf32>
    %162 = arith.mulf %161, %161 : vector<8x32xf32>
    %cst_75 = arith.constant dense<0.000000e+00> : vector<8xf32>
    %163 = vector.multi_reduction <add>, %162, %cst_75 [1] : vector<8x32xf32> to vector<8xf32>
    %164 = vector.shape_cast %163 : vector<8xf32> to vector<8x1xf32>
    %cst_76 = arith.constant 3.200000e+01 : f32
    %165 = vector.broadcast %cst_76 : f32 to vector<8x1xf32>
    %166 = arith.divf %164, %165 : vector<8x1xf32>
    %cst_77 = arith.constant 9.99999974E-6 : f32
    %167 = vector.broadcast %cst_77 : f32 to vector<8x1xf32>
    %168 = arith.addf %166, %167 : vector<8x1xf32>
    %169 = math.rsqrt %168 : vector<8x1xf32>
    %170 = vector.broadcast %169 : vector<8x1xf32> to vector<8x32xf32>
    %171 = arith.mulf %161, %170 : vector<8x32xf32>
    %172 = vector.broadcast %154 : vector<1x32xf32> to vector<8x32xf32>
    %173 = arith.mulf %171, %172 : vector<8x32xf32>
    %174 = vector.broadcast %155 : vector<1x32xf32> to vector<8x32xf32>
    %175 = arith.addf %173, %174 : vector<8x32xf32>
    %c0_78 = arith.constant 0 : index
    %c0_79 = arith.constant 0 : index
    %176 = vector.load %arg22[%c0_78, %c0_79] : memref<32x32xf32, #tpu.memory_space<vmem>>, vector<32x32xf32>
    %c0_80 = arith.constant 0 : index
    %c0_81 = arith.constant 0 : index
    %c0_82 = arith.constant 0 : index
    %177 = vector.load %arg14[%c0_80, %c0_81, %c0_82] : memref<4x32x32xf32, #tpu.memory_space<vmem>>, vector<1x32x32xf32>
    %178 = vector.shape_cast %177 : vector<1x32x32xf32> to vector<32x32xf32>
    %cst_83 = arith.constant dense<0.000000e+00> : vector<8x32xf32>
    %179 = tpu.matmul %175, %178, %cst_83 {dimension_numbers = #tpu.dot_dimension_numbers<[1], [0], [0], [1], [0, 0, 1, 1], [], []>} : vector<8x32xf32>, vector<32x32xf32>, vector<8x32xf32> -> vector<8x32xf32>
    %180 = vector.extract_strided_slice %22 {offsets = [6, 0], sizes = [1, 32], strides = [1, 1]} : vector<10x32xf32> to vector<1x32xf32>
    %181 = vector.broadcast %180 : vector<1x32xf32> to vector<8x32xf32>
    %182 = arith.addf %179, %181 : vector<8x32xf32>
    %c0_84 = arith.constant 0 : index
    %c0_85 = arith.constant 0 : index
    %183 = vector.load %arg20[%c0_84, %c0_85] : memref<32x8xf32, #tpu.memory_space<vmem>>, vector<32x8xf32>
    %cst_86 = arith.constant dense<0.000000e+00> : vector<32x32xf32>
    %184 = tpu.matmul %183, %182, %cst_86 {dimension_numbers = #tpu.dot_dimension_numbers<[1], [0], [0], [1], [0, 0, 1, 1], [], []>} : vector<32x8xf32>, vector<8x32xf32>, vector<32x32xf32> -> vector<32x32xf32>
    %185 = arith.mulf %184, %176 : vector<32x32xf32>
    %c3 = arith.constant 3 : index
    %c0_87 = arith.constant 0 : index
    %c0_88 = arith.constant 0 : index
    %186 = vector.load %arg14[%c3, %c0_87, %c0_88] : memref<4x32x32xf32, #tpu.memory_space<vmem>>, vector<1x32x32xf32>
    %187 = vector.shape_cast %186 : vector<1x32x32xf32> to vector<32x32xf32>
    %cst_89 = arith.constant dense<0.000000e+00> : vector<32x12xf32>
    %188 = tpu.matmul %187, %15, %cst_89 {dimension_numbers = #tpu.dot_dimension_numbers<[1], [0], [0], [1], [0, 0, 1, 1], [], []>} : vector<32x32xf32>, vector<32x12xf32>, vector<32x12xf32> -> vector<32x12xf32>
    %189 = vector.extract_strided_slice %23 {offsets = [64, 0], sizes = [32, 1], strides = [1, 1]} : vector<96x1xf32> to vector<32x1xf32>
    %190 = vector.broadcast %189 : vector<32x1xf32> to vector<32x12xf32>
    %191 = arith.addf %188, %190 : vector<32x12xf32>
    %cst_90 = arith.constant dense<0.000000e+00> : vector<32x12xf32>
    %192 = tpu.matmul %185, %191, %cst_90 {dimension_numbers = #tpu.dot_dimension_numbers<[1], [0], [0], [1], [0, 0, 1, 1], [], []>} : vector<32x32xf32>, vector<32x12xf32>, vector<32x12xf32> -> vector<32x12xf32>
    %cst_91 = arith.constant 5.000000e-01 : f32
    %193 = vector.broadcast %cst_91 : f32 to vector<32x12xf32>
    %194 = arith.cmpf olt, %21, %193 : vector<32x12xf32>
    %cst_92 = arith.constant -1.000000e+04 : f32
    %195 = vector.broadcast %cst_92 : f32 to vector<32x12xf32>
    %196 = arith.select %194, %195, %192 : vector<32x12xi1>, vector<32x12xf32>
    %cst_93 = arith.constant dense<0xFF800000> : vector<32xf32>
    %197 = vector.multi_reduction <maximumf>, %196, %cst_93 [1] : vector<32x12xf32> to vector<32xf32>
    %198 = vector.shape_cast %197 : vector<32xf32> to vector<32x1xf32>
    %199 = vector.broadcast %198 : vector<32x1xf32> to vector<32x12xf32>
    %200 = arith.subf %196, %199 : vector<32x12xf32>
    %201 = math.exp %200 : vector<32x12xf32>
    %cst_94 = arith.constant dense<0.000000e+00> : vector<32xf32>
    %202 = vector.multi_reduction <add>, %201, %cst_94 [1] : vector<32x12xf32> to vector<32xf32>
    %203 = vector.shape_cast %202 : vector<32xf32> to vector<32x1xf32>
    %204 = tpu.reciprocal %203 {approx = true} : vector<32x1xf32> -> vector<32x1xf32>
    %205 = vector.broadcast %204 : vector<32x1xf32> to vector<32x12xf32>
    %206 = arith.mulf %201, %205 : vector<32x12xf32>
    %c1 = arith.constant 1 : index
    %c0_95 = arith.constant 0 : index
    %c0_96 = arith.constant 0 : index
    %207 = vector.load %arg14[%c1, %c0_95, %c0_96] : memref<4x32x32xf32, #tpu.memory_space<vmem>>, vector<1x32x32xf32>
    %208 = vector.shape_cast %207 : vector<1x32x32xf32> to vector<32x32xf32>
    %cst_97 = arith.constant dense<0.000000e+00> : vector<12x32xf32>
    %209 = tpu.matmul %13, %208, %cst_97 {dimension_numbers = #tpu.dot_dimension_numbers<[1], [0], [0], [1], [0, 0, 1, 1], [], []>} : vector<12x32xf32>, vector<32x32xf32>, vector<12x32xf32> -> vector<12x32xf32>
    %210 = vector.extract_strided_slice %22 {offsets = [7, 0], sizes = [1, 32], strides = [1, 1]} : vector<10x32xf32> to vector<1x32xf32>
    %211 = vector.broadcast %210 : vector<1x32xf32> to vector<12x32xf32>
    %212 = arith.addf %209, %211 : vector<12x32xf32>
    %cst_98 = arith.constant dense<0.000000e+00> : vector<32x32xf32>
    %213 = tpu.matmul %206, %212, %cst_98 {dimension_numbers = #tpu.dot_dimension_numbers<[1], [0], [0], [1], [0, 0, 1, 1], [], []>} : vector<32x12xf32>, vector<12x32xf32>, vector<32x32xf32> -> vector<32x32xf32>
    %214 = arith.mulf %213, %176 : vector<32x32xf32>
    %c0_99 = arith.constant 0 : index
    %c0_100 = arith.constant 0 : index
    %215 = vector.load %arg21[%c0_99, %c0_100] : memref<8x32xf32, #tpu.memory_space<vmem>>, vector<8x32xf32>
    %cst_101 = arith.constant dense<0.000000e+00> : vector<8x32xf32>
    %216 = tpu.matmul %215, %214, %cst_101 {dimension_numbers = #tpu.dot_dimension_numbers<[1], [0], [0], [1], [0, 0, 1, 1], [], []>} : vector<8x32xf32>, vector<32x32xf32>, vector<8x32xf32> -> vector<8x32xf32>
    %c2 = arith.constant 2 : index
    %c0_102 = arith.constant 0 : index
    %c0_103 = arith.constant 0 : index
    %217 = vector.load %arg14[%c2, %c0_102, %c0_103] : memref<4x32x32xf32, #tpu.memory_space<vmem>>, vector<1x32x32xf32>
    %218 = vector.shape_cast %217 : vector<1x32x32xf32> to vector<32x32xf32>
    %cst_104 = arith.constant dense<0.000000e+00> : vector<8x32xf32>
    %219 = tpu.matmul %216, %218, %cst_104 {dimension_numbers = #tpu.dot_dimension_numbers<[1], [0], [0], [1], [0, 0, 1, 1], [], []>} : vector<8x32xf32>, vector<32x32xf32>, vector<8x32xf32> -> vector<8x32xf32>
    %220 = arith.addf %153, %219 : vector<8x32xf32>
    %221 = vector.extract_strided_slice %22 {offsets = [8, 0], sizes = [1, 32], strides = [1, 1]} : vector<10x32xf32> to vector<1x32xf32>
    %222 = vector.broadcast %221 : vector<1x32xf32> to vector<8x32xf32>
    %223 = arith.addf %220, %222 : vector<8x32xf32>
    %224 = vector.extract_strided_slice %22 {offsets = [4, 0], sizes = [1, 32], strides = [1, 1]} : vector<10x32xf32> to vector<1x32xf32>
    %225 = vector.extract_strided_slice %22 {offsets = [5, 0], sizes = [1, 32], strides = [1, 1]} : vector<10x32xf32> to vector<1x32xf32>
    %cst_105 = arith.constant dense<0.000000e+00> : vector<8xf32>
    %226 = vector.multi_reduction <add>, %223, %cst_105 [1] : vector<8x32xf32> to vector<8xf32>
    %227 = vector.shape_cast %226 : vector<8xf32> to vector<8x1xf32>
    %cst_106 = arith.constant 3.200000e+01 : f32
    %228 = vector.broadcast %cst_106 : f32 to vector<8x1xf32>
    %229 = arith.divf %227, %228 : vector<8x1xf32>
    %230 = vector.broadcast %229 : vector<8x1xf32> to vector<8x32xf32>
    %231 = arith.subf %223, %230 : vector<8x32xf32>
    %232 = arith.mulf %231, %231 : vector<8x32xf32>
    %cst_107 = arith.constant dense<0.000000e+00> : vector<8xf32>
    %233 = vector.multi_reduction <add>, %232, %cst_107 [1] : vector<8x32xf32> to vector<8xf32>
    %234 = vector.shape_cast %233 : vector<8xf32> to vector<8x1xf32>
    %cst_108 = arith.constant 3.200000e+01 : f32
    %235 = vector.broadcast %cst_108 : f32 to vector<8x1xf32>
    %236 = arith.divf %234, %235 : vector<8x1xf32>
    %cst_109 = arith.constant 9.99999974E-6 : f32
    %237 = vector.broadcast %cst_109 : f32 to vector<8x1xf32>
    %238 = arith.addf %236, %237 : vector<8x1xf32>
    %239 = math.rsqrt %238 : vector<8x1xf32>
    %240 = vector.broadcast %239 : vector<8x1xf32> to vector<8x32xf32>
    %241 = arith.mulf %231, %240 : vector<8x32xf32>
    %242 = vector.broadcast %224 : vector<1x32xf32> to vector<8x32xf32>
    %243 = arith.mulf %241, %242 : vector<8x32xf32>
    %244 = vector.broadcast %225 : vector<1x32xf32> to vector<8x32xf32>
    %245 = arith.addf %243, %244 : vector<8x32xf32>
    %c0_110 = arith.constant 0 : index
    %c0_111 = arith.constant 0 : index
    %246 = vector.load %arg15[%c0_110, %c0_111] : memref<32x64xf32, #tpu.memory_space<vmem>>, vector<32x64xf32>
    %cst_112 = arith.constant dense<0.000000e+00> : vector<8x64xf32>
    %247 = tpu.matmul %245, %246, %cst_112 {dimension_numbers = #tpu.dot_dimension_numbers<[1], [0], [0], [1], [0, 0, 1, 1], [], []>} : vector<8x32xf32>, vector<32x64xf32>, vector<8x64xf32> -> vector<8x64xf32>
    %c0_113 = arith.constant 0 : index
    %c0_114 = arith.constant 0 : index
    %248 = vector.load %arg16[%c0_113, %c0_114] : memref<1x64xf32, #tpu.memory_space<vmem>>, vector<1x64xf32>
    %249 = vector.broadcast %248 : vector<1x64xf32> to vector<8x64xf32>
    %250 = arith.addf %247, %249 : vector<8x64xf32>
    %cst_115 = arith.constant 0.000000e+00 : f32
    %251 = vector.broadcast %cst_115 : f32 to vector<8x64xf32>
    %252 = arith.maximumf %250, %251 : vector<8x64xf32>
    %c0_116 = arith.constant 0 : index
    %c0_117 = arith.constant 0 : index
    %253 = vector.load %arg17[%c0_116, %c0_117] : memref<64x32xf32, #tpu.memory_space<vmem>>, vector<64x32xf32>
    %cst_118 = arith.constant dense<0.000000e+00> : vector<8x32xf32>
    %254 = tpu.matmul %252, %253, %cst_118 {dimension_numbers = #tpu.dot_dimension_numbers<[1], [0], [0], [1], [0, 0, 1, 1], [], []>} : vector<8x64xf32>, vector<64x32xf32>, vector<8x32xf32> -> vector<8x32xf32>
    %255 = arith.addf %223, %254 : vector<8x32xf32>
    %256 = vector.extract_strided_slice %22 {offsets = [9, 0], sizes = [1, 32], strides = [1, 1]} : vector<10x32xf32> to vector<1x32xf32>
    %257 = vector.broadcast %256 : vector<1x32xf32> to vector<8x32xf32>
    %258 = arith.addf %255, %257 : vector<8x32xf32>
    %c0_119 = arith.constant 0 : index
    %c0_120 = arith.constant 0 : index
    %c0_121 = arith.constant 0 : index
    %259 = vector.load %arg23[%c0_119, %c0_120, %c0_121] : memref<1x8x32xf32, #tpu.memory_space<vmem>>, vector<1x8x32xf32>
    %260 = vector.shape_cast %259 : vector<1x8x32xf32> to vector<8x32xf32>
    %261 = vector.shape_cast %258 : vector<8x32xf32> to vector<1x8x32xf32>
    tpu.vector_store %arg23[%c0_119, %c0_120, %c0_121], %261 {strides = array<i32>} : memref<1x8x32xf32, #tpu.memory_space<vmem>>, vector<1x8x32xf32>,
    return
  }
  func.func @transform_0(%arg0: i32) -> (i32, i32, i32) {
    %c0_i32 = arith.constant 0 : i32
    %c0_i32_0 = arith.constant 0 : i32
    %c0_i32_1 = arith.constant 0 : i32
    return %arg0, %c0_i32, %c0_i32_0 : i32, i32, i32
  }
  func.func @transform_1(%arg0: i32) -> (i32, i32, i32) {
    %c0_i32 = arith.constant 0 : i32
    %c0_i32_0 = arith.constant 0 : i32
    %c0_i32_1 = arith.constant 0 : i32
    return %arg0, %c0_i32, %c0_i32_0 : i32, i32, i32
  }
  func.func @transform_2(%arg0: i32) -> (i32, i32, i32, i32) {
    %c0_i32 = arith.constant 0 : i32
    %c0_i32_0 = arith.constant 0 : i32
    %c0_i32_1 = arith.constant 0 : i32
    %c0_i32_2 = arith.constant 0 : i32
    return %arg0, %c0_i32, %c0_i32_0, %c0_i32_1 : i32, i32, i32, i32
  }
  func.func @transform_3(%arg0: i32) -> (i32, i32, i32) {
    %c0_i32 = arith.constant 0 : i32
    %c0_i32_0 = arith.constant 0 : i32
    %c0_i32_1 = arith.constant 0 : i32
    return %arg0, %c0_i32, %c0_i32_0 : i32, i32, i32
  }
  func.func @transform_4(%arg0: i32) -> (i32, i32, i32) {
    %c0_i32 = arith.constant 0 : i32
    %c0_i32_0 = arith.constant 0 : i32
    %c0_i32_1 = arith.constant 0 : i32
    return %arg0, %c0_i32, %c0_i32_0 : i32, i32, i32
  }
  func.func @transform_5(%arg0: i32) -> (i32, i32, i32) {
    %c0_i32 = arith.constant 0 : i32
    %c0_i32_0 = arith.constant 0 : i32
    %c0_i32_1 = arith.constant 0 : i32
    return %arg0, %c0_i32, %c0_i32_0 : i32, i32, i32
  }
  func.func @transform_6(%arg0: i32) -> (i32, i32, i32) {
    %c0_i32 = arith.constant 0 : i32
    %c0_i32_0 = arith.constant 0 : i32
    %c0_i32_1 = arith.constant 0 : i32
    return %arg0, %c0_i32, %c0_i32_0 : i32, i32, i32
  }
  func.func @transform_7(%arg0: i32) -> (i32, i32, i32) {
    %c0_i32 = arith.constant 0 : i32
    %c0_i32_0 = arith.constant 0 : i32
    %c0_i32_1 = arith.constant 0 : i32
    return %arg0, %c0_i32, %c0_i32_0 : i32, i32, i32
  }
  func.func @transform_8(%arg0: i32) -> (i32, i32) {
    %c0_i32 = arith.constant 0 : i32
    %c0_i32_0 = arith.constant 0 : i32
    %c0_i32_1 = arith.constant 0 : i32
    return %c0_i32, %c0_i32_0 : i32, i32
  }
  func.func @transform_9(%arg0: i32) -> (i32, i32) {
    %c0_i32 = arith.constant 0 : i32
    %c0_i32_0 = arith.constant 0 : i32
    %c0_i32_1 = arith.constant 0 : i32
    return %c0_i32, %c0_i32_0 : i32, i32
  }
  func.func @transform_10(%arg0: i32) -> (i32, i32) {
    %c0_i32 = arith.constant 0 : i32
    %c0_i32_0 = arith.constant 0 : i32
    %c0_i32_1 = arith.constant 0 : i32
    return %c0_i32, %c0_i32_0 : i32, i32
  }
  func.func @transform_11(%arg0: i32) -> (i32, i32) {
    %c0_i32 = arith.constant 0 : i32
    %c0_i32_0 = arith.constant 0 : i32
    %c0_i32_1 = arith.constant 0 : i32
    return %c0_i32, %c0_i32_0 : i32, i32
  }
  func.func @transform_12(%arg0: i32) -> (i32, i32) {
    %c0_i32 = arith.constant 0 : i32
    %c0_i32_0 = arith.constant 0 : i32
    %c0_i32_1 = arith.constant 0 : i32
    return %c0_i32, %c0_i32_0 : i32, i32
  }
  func.func @transform_13(%arg0: i32) -> (i32, i32, i32) {
    %c0_i32 = arith.constant 0 : i32
    %c0_i32_0 = arith.constant 0 : i32
    %c0_i32_1 = arith.constant 0 : i32
    %c0_i32_2 = arith.constant 0 : i32
    return %c0_i32, %c0_i32_0, %c0_i32_1 : i32, i32, i32
  }
  func.func @transform_14(%arg0: i32) -> (i32, i32) {
    %c0_i32 = arith.constant 0 : i32
    %c0_i32_0 = arith.constant 0 : i32
    %c0_i32_1 = arith.constant 0 : i32
    return %c0_i32, %c0_i32_0 : i32, i32
  }
  func.func @transform_15(%arg0: i32) -> (i32, i32) {
    %c0_i32 = arith.constant 0 : i32
    %c0_i32_0 = arith.constant 0 : i32
    %c0_i32_1 = arith.constant 0 : i32
    return %c0_i32, %c0_i32_0 : i32, i32
  }
  func.func @transform_16(%arg0: i32) -> (i32, i32) {
    %c0_i32 = arith.constant 0 : i32
    %c0_i32_0 = arith.constant 0 : i32
    %c0_i32_1 = arith.constant 0 : i32
    return %c0_i32, %c0_i32_0 : i32, i32
  }
  func.func @transform_17(%arg0: i32) -> (i32, i32) {
    %c0_i32 = arith.constant 0 : i32
    %c0_i32_0 = arith.constant 0 : i32
    %c0_i32_1 = arith.constant 0 : i32
    return %c0_i32, %c0_i32_0 : i32, i32
  }
  func.func @transform_18(%arg0: i32) -> (i32, i32) {
    %c0_i32 = arith.constant 0 : i32
    %c0_i32_0 = arith.constant 0 : i32
    %c0_i32_1 = arith.constant 0 : i32
    return %c0_i32, %c0_i32_0 : i32, i32
  }
  func.func @transform_19(%arg0: i32) -> (i32, i32) {
    %c0_i32 = arith.constant 0 : i32
    %c0_i32_0 = arith.constant 0 : i32
    %c0_i32_1 = arith.constant 0 : i32
    return %c0_i32, %c0_i32_0 : i32, i32
  }
  func.func @transform_20(%arg0: i32) -> (i32, i32) {
    %c0_i32 = arith.constant 0 : i32
    %c0_i32_0 = arith.constant 0 : i32
    %c0_i32_1 = arith.constant 0 : i32
    return %c0_i32, %c0_i32_0 : i32, i32
  }
  func.func @transform_21(%arg0: i32) -> (i32, i32) {
    %c0_i32 = arith.constant 0 : i32
    %c0_i32_0 = arith.constant 0 : i32
    %c0_i32_1 = arith.constant 0 : i32
    return %c0_i32, %c0_i32_0 : i32, i32
  }
  func.func @transform_22(%arg0: i32) -> (i32, i32, i32) {
    %c0_i32 = arith.constant 0 : i32
    %c0_i32_0 = arith.constant 0 : i32
    %c0_i32_1 = arith.constant 0 : i32
    return %arg0, %c0_i32, %c0_i32_0 : i32, i32, i32
  }
}

</mosaic_0001>

<bundles_post_ra>
// kernel: tile.24
= control target key start
LH: loop header
LB: loop body
LE: loop exit
PB: predicated region body
PF: predicated region fallthrough
CT: control target
= control target key end

     0   :  { %vm83_vm0 = vcmask 1047556   ;;  %vm85_vm1 = vcmask 64512   ;;  %s196_s9 = smov 24   ;;  %s197_s14 = smov 8   ;;  %vm104_vm2 = vcmask 261312   ;;  %vm125_vm3 = vcmask 195712   ;;  %s290_s0 = inlined_call_operand.vmem [shape: f32[2,8,4,8], index: 0, kind: input, shape index: {}]   ;;  %s291_s1 = inlined_call_operand.vmem [shape: f32[2,8,32], index: 1, kind: output, shape index: {}]  }
   0x1   :  { %v181_v0 = vld [vmem:[%s290_s0 + $0x1c] sm:$0xf]  ;;  %v182_v1 = vld [vmem:[%s290_s0 + $0x18] sm:$0xf]  ;;  %v183_v2 = vld [vmem:[%s290_s0 + $0x14] sm:$0xf] }
   0x2   :  { %49 = vst [vmem:[#allocation0 + $0x38] sm:$0xf] %v181_v0  ;;  %54 = vst [vmem:[#allocation0 + $0x30] sm:$0xf] %v182_v1  ;;  %v184_v3 = vld [vmem:[%s290_s0 + $0x10] sm:$0xf] }
   0x3   :  { %59 = vst [vmem:[#allocation0 + $0x28] sm:$0xf] %v183_v2  ;;  %v185_v4 = vld [vmem:[%s290_s0 + $0xc] sm:$0xf]  ;;  %v186_v5 = vld [vmem:[%s290_s0 + $0x8] sm:$0xf] }
   0x4   :  { %64 = vst [vmem:[#allocation0 + $0x20] sm:$0xf] %v184_v3  ;;  %69 = vst [vmem:[#allocation0 + $0x18] sm:$0xf] %v185_v4  ;;  %v187_v6 = vld [vmem:[%s290_s0 + $0x4] sm:$0xf] }
   0x5   :  { %74 = vst [vmem:[#allocation0 + $0x10] sm:$0xf] %v186_v5  ;;  %v79_v7 = vld [vmem:[%s290_s0] sm:$0xf]  ;;  %78 = vst [vmem:[#allocation0 + $0x8] sm:$0xf] %v187_v6 }
   0x6   :  { %80 = vst [vmem:[#allocation0] sm:$0xf] %v79_v7  ;;  %v173_v8 = vld [vmem:[%s290_s0 + $0x3c] sm:$0xf]  ;;  %v174_v9 = vld [vmem:[%s290_s0 + $0x38] sm:$0xf] }
   0x7   :  { %9 = vst [vmem:[#allocation0 + $0x78] sm:$0xf] %v173_v8  ;;  %14 = vst [vmem:[#allocation0 + $0x70] sm:$0xf] %v174_v9  ;;  %v175_v10 = vld [vmem:[%s290_s0 + $0x34] sm:$0xf] }
   0x8   :  { %v176_v11 = vld [vmem:[%s290_s0 + $0x30] sm:$0xf]  ;;  %v177_v12 = vld [vmem:[%s290_s0 + $0x2c] sm:$0xf]  ;;  %19 = vst [vmem:[#allocation0 + $0x68] sm:$0xf] %v175_v10 }
   0x9   :  { %24 = vst [vmem:[#allocation0 + $0x60] sm:$0xf] %v176_v11  ;;  %29 = vst [vmem:[#allocation0 + $0x58] sm:$0xf] %v177_v12  ;;  %v178_v13 = vld [vmem:[%s290_s0 + $0x28] sm:$0xf] }
   0xa   :  { %v179_v14 = vld [vmem:[%s290_s0 + $0x24] sm:$0xf]  ;;  %v180_v15 = vld [vmem:[%s290_s0 + $0x20] sm:$0xf]  ;;  %34 = vst [vmem:[#allocation0 + $0x50] sm:$0xf] %v178_v13 }
   0xb   :  { %39 = vst [vmem:[#allocation0 + $0x48] sm:$0xf] %v179_v14  ;;  %44 = vst [vmem:[#allocation0 + $0x40] sm:$0xf] %v180_v15  ;;  %s195_s0 = smov 16   ;;  %vm146_vm4 = vcmask 130112  }
   0xc   :  { %v120_v16 = vld [vmem:[#allocation0 + $0x2] ss:$8 sm:$0xf0]   ;;  %v99_v17 = vld [vmem:[#allocation0 + $0x3] ss:$8 sm:$0xf0]  }
   0xd   :  { %v118_v18 = vld [vmem:[#allocation0 + $0x2] ss:$8 sm:$0xf]   ;;  %v97_v19 = vld [vmem:[#allocation0 + $0x3] ss:$8 sm:$0xf]  }
   0xe   :  { %v122_v20 = vsel %vm83_vm0, %v120_v16, %v118_v18  ;;  %v101_v21 = vsel %vm83_vm0, %v99_v17, %v97_v19  ;;  %v139_v24 = vld [vmem:[#allocation0 + $0x1] ss:$8 sm:$0xf]   ;;  %v81_v32 = vld [vmem:[#allocation0] ss:$8 sm:$0xf]  }
   0xf   :  { %123 = vrot.lane.b32.xlu1 %v122_v20, %s195_s0  ;;  %102 = vrot.lane.b32.xlu0 %v101_v21, %s196_s9  ;;  %v141_v25 = vld [vmem:[#allocation0 + $0x1] ss:$8 sm:$0xf0]   ;;  %v82_v33 = vld [vmem:[#allocation0] ss:$8 sm:$0xf0]  }
  0x10   :  { %v130_v22 = vld [vmem:[#allocation0 + $0x42] ss:$8 sm:$0xf0]   ;;  %v109_v23 = vld [vmem:[#allocation0 + $0x43] ss:$8 sm:$0xf0]   ;;  %v84_v34 = vsel %vm83_vm0, %v82_v33, %v81_v32  ;;  %v143_v38 = vsel %vm83_vm0, %v141_v25, %v139_v24 }
  0x11   :  { %v151_v31 = vld [vmem:[#allocation0 + $0x41] ss:$8 sm:$0xf0]   ;;  %v90_v36 = vld [vmem:[#allocation0 + $0x40] ss:$8 sm:$0xf0]  }
  0x12   :  { %v128_v26 = vld [vmem:[#allocation0 + $0x42] ss:$8 sm:$0xf]   ;;  %v107_v27 = vld [vmem:[#allocation0 + $0x43] ss:$8 sm:$0xf]  }
  0x13   :  { %v132_v28 = vsel %vm83_vm0, %v130_v22, %v128_v26  ;;  %v111_v29 = vsel %vm83_vm0, %v109_v23, %v107_v27  ;;  %v149_v30 = vld [vmem:[#allocation0 + $0x41] ss:$8 sm:$0xf]   ;;  %v88_v35 = vld [vmem:[#allocation0 + $0x40] ss:$8 sm:$0xf]  }
  0x14   :  { %133 = vrot.lane.b32.xlu1 %v132_v28, %s195_s0  ;;  %112 = vrot.lane.b32.xlu0 %v111_v29, %s196_s9  ;;  %v153_v37 = vsel %vm83_vm0, %v151_v31, %v149_v30  ;;  %86 = vst.msk [vmem:[%s291_s1] sm:$0xff] %vm85_vm1, %v84_v34   ;;  %v92_v39 = vsel %vm83_vm0, %v90_v36, %v88_v35 }
  0x15   :  { %188 = vst.msk [vmem:[%s291_s1 + $0x8] sm:$0xff] %vm85_vm1, %v92_v39  }
  0x18   :  { %154 = vrot.lane.b32.xlu1 %v153_v37, %s197_s14  ;;  %144 = vrot.lane.b32.xlu0 %v143_v38, %s197_s14 }
  0x81   :  { %v124_v40 = vpop.permute.xlu1 %123   ;;  %v103_v41 = vpop.permute.xlu0 %102  }
  0x82   :  { %105 = vst.msk [vmem:[%s291_s1] sm:$0xff] %vm104_vm2, %v103_v41  }
  0x83   :  { %126 = vst.msk [vmem:[%s291_s1] sm:$0xff] %vm125_vm3, %v124_v40  }
  0x86   :  { %v134_v42 = vpop.permute.xlu1 %133   ;;  %v113_v43 = vpop.permute.xlu0 %112  }
  0x87   :  { %189 = vst.msk [vmem:[%s291_s1 + $0x8] sm:$0xff] %vm104_vm2, %v113_v43  }
  0x88   :  { %190 = vst.msk [vmem:[%s291_s1 + $0x8] sm:$0xff] %vm125_vm3, %v134_v42  }
  0x8a   :  { %v155_v44 = vpop.permute.xlu1 %154   ;;  %v145_v45 = vpop.permute.xlu0 %144  }
  0x8b   :  { %191 = vst.msk [vmem:[%s291_s1 + $0x8] sm:$0xff] %vm146_vm4, %v155_v44   ;;  %147 = vst.msk [vmem:[%s291_s1] sm:$0xff] %vm146_vm4, %v145_v45  }

// kernel: decoder_layer.1
= control target key start
LH: loop header
LB: loop body
LE: loop exit
PB: predicated region body
PF: predicated region fallthrough
CT: control target
= control target key end

     0   :  { %s4587_s0 = inlined_call_operand.vmem [shape: f32[2,8,32], index: 0, kind: input, shape index: {}]   ;;  %s4588_s1 = inlined_call_operand.vmem [shape: f32[2,32,8], index: 1, kind: input, shape index: {}]   ;;  %s4589_s2 = inlined_call_operand.vmem [shape: f32[2,3,32,32], index: 2, kind: input, shape index: {}]   ;;  %s4590_s3 = inlined_call_operand.vmem [shape: f32[2,12,32], index: 3, kind: input, shape index: {}]   ;;  %s4591_s4 = inlined_call_operand.vmem [shape: f32[2,32,12], index: 4, kind: input, shape index: {}]   ;;  %s4592_s5 = inlined_call_operand.vmem [shape: f32[2,32,8], index: 5, kind: input, shape index: {}]   ;;  %s4593_s6 = inlined_call_operand.vmem [shape: f32[2,8,32], index: 6, kind: input, shape index: {}]   ;;  %s4594_s7 = inlined_call_operand.vmem [shape: f32[2,32,12], index: 7, kind: input, shape index: {}]   ;;  %s4595_s8 = inlined_call_operand.vmem [shape: f32[10,32], index: 8, kind: input, shape index: {}]   ;;  %s4596_s9 = inlined_call_operand.vmem [shape: f32[32,160], index: 9, kind: input, shape index: {}]   ;;  %s4597_s10 = inlined_call_operand.vmem [shape: f32[1,160], index: 10, kind: input, shape index: {}]   ;;  %s4598_s11 = inlined_call_operand.vmem [shape: f32[64,32], index: 11, kind: input, shape index: {}]   ;;  %s4599_s12 = inlined_call_operand.vmem [shape: f32[96,1], index: 12, kind: input, shape index: {}]   ;;  %s4600_s13 = inlined_call_operand.vmem [shape: f32[4,32,32], index: 13, kind: input, shape index: {}]   ;;  %s4601_s14 = inlined_call_operand.vmem [shape: f32[32,64], index: 14, kind: input, shape index: {}]   ;;  %s4602_s15 = inlined_call_operand.vmem [shape: f32[1,64], index: 15, kind: input, shape index: {}]   ;;  %s4603_s16 = inlined_call_operand.vmem [shape: f32[64,32], index: 16, kind: input, shape index: {}]   ;;  %s4604_s17 = inlined_call_operand.vmem [shape: f32[32,8], index: 17, kind: input, shape index: {}]   ;;  %s4605_s18 = inlined_call_operand.vmem [shape: f32[8,32], index: 18, kind: input, shape index: {}]   ;;  %s4606_s19 = inlined_call_operand.vmem [shape: f32[32,8], index: 19, kind: input, shape index: {}]   ;;  %s4607_s20 = inlined_call_operand.vmem [shape: f32[8,32], index: 20, kind: input, shape index: {}]   ;;  %s4608_s21 = inlined_call_operand.vmem [shape: f32[32,32], index: 21, kind: input, shape index: {}]   ;;  %s4609_s22 = inlined_call_operand.hbm [shape: f32[2,8,32], index: 22, kind: output, shape index: {}]  }
   0x1   :  { %4616 = sst [smem:[#allocation10_spill]] %s4587_s0 }
   0x2   :  { %4617 = sst [smem:[#allocation11_spill]] %s4588_s1 }
   0x3   :  { %4618 = sst [smem:[#allocation12_spill]] %s4589_s2 }
   0x4   :  { %4619 = sst [smem:[#allocation13_spill]] %s4590_s3 }
   0x5   :  { %4620 = sst [smem:[#allocation14_spill]] %s4591_s4 }
   0x6   :  { %4621 = sst [smem:[#allocation15_spill]] %s4592_s5 }
   0x7   :  { %4622 = sst [smem:[#allocation16_spill]] %s4593_s6 }
   0x8   :  { %4623 = sst [smem:[#allocation17_spill]] %s4596_s9 }
   0x9   :  { %4624 = sst [smem:[#allocation18_spill]] %s4597_s10 }
   0xa   :  { %27 = vsyncpa [#allocation3], 0 }
   0xb   :  { %29 = vsyncpa [#allocation3 + $0x1], 0  ;;  %s3940_s3 = smov 0   ;;  %s3942_s28 = smov 0  }
   0xc   :  { %s3944_s29 = smov 0   ;;  %s3946_s30 = smov 0  }
   0xd LB: > { %4625 = sst [smem:[#allocation5_spill]] %s3804_s3  ;;  %s3961_s4 = sadd.s32 4294967295, %s3816_s30   ;;  %s3816_s30 = sphi %s3946_s30, %s4644_s30   ;;  %s3812_s29 = sphi %s3944_s29, %s4646_s29   ;;  %s3808_s28 = sphi %s3942_s28, %s4648_s28   ;;  %s3804_s3 = sphi %s3940_s3, %s4647_s3  }
   0xe   : > { %4626 = sst [smem:[#allocation6_spill]] %s3812_s29  ;;  %s3226_s0 = sadd.s32 4294967294, %s3816_s30  }
   0xf   : > { %s3965_s23 = sadd.s32 1, %s3816_s30   ;;  %s544_s1 = sadd.s32 1, %s3812_s29 }
  0x10   : > { %4627 = sst [smem:[#allocation7_spill]] %s3965_s23  ;;  %s541_s5 = ssub.s32 %s3816_s30, %s3965_s23 }
  0x11   : > { %p554_p0 = scmp.ne.s32.totalorder %s3812_s29, %s3808_s28  ;;  %p542_p1 = scmp.eq.s32.totalorder %s541_s5, 0 }
  0x12   : > { %p555_p2 = scmp.eq.s32.totalorder %s3961_s4, 1  ;;  %p560_p3 = scmp.ne.s32.totalorder %s3808_s28, %s3804_s3 }
  0x13   : > { %p561_p4 = scmp.eq.s32.totalorder %s3226_s0, 1  ;;  %p3229_p7 = scmp.ge.s32.totalorder %s3816_s30, 1 }
  0x14   : > { %s3976_s24 = scalar_select %p542_p1, %s3812_s29, %s544_s1  }
  0x15   : > { %p3978_p5 = por %p555_p2, %p554_p0  ;;  %p3982_p6 = por %p561_p4, %p560_p3 }
  0x16   : > { %4628 = sst [smem:[#allocation8_spill]] %s3976_s24  ;;  %p683_p8 = scmp.lt.s32.totalorder %s3816_s30, 3 }
  0x17   : > { %s4630_s25 = scalar_select %p3982_p6, 1, 0 }
  0x18   : > { %p684_p9 = pnand %p3229_p7, %p683_p8 }
  0x19   : > { %4631 = sst [smem:[#allocation9_spill]] %s4630_s25  ;;  %p778_p10 = scmp.lt.s32.totalorder (!%p684_p9), %s3961_s4, 1 }
  0x1a   : > { %687 = sbr.rel (%p684_p9) target bundleno = 4055 (0xfd7), region = 108  ;;  %s4632_s1 = sld [smem:[#allocation10_spill]] (!%p684_p9) }
  0x1b   : > { %s4633_s25 = sld [smem:[#allocation11_spill]] (!%p684_p9) }
  0x1c   : > { %s4634_s9 = sld [smem:[#allocation17_spill]] (!%p684_p9) }
  0x1d   : > { %s4635_s10 = sld [smem:[#allocation18_spill]] (!%p684_p9) }
  0x1e   : > { %s4636_s27 = sld [smem:[#allocation12_spill]] (!%p684_p9) }
  0x1f   : > { %s3990_s26 = scalar_select %p778_p10, %s3961_s4, 1  ;;  %vm862_vm0 = vcmask 261120   ;;  %vm987_vm1 = vcmask 64512   ;;  %v1026_v29 = vld [vmem:[%s4598_s11] sm:$0xff]  ;;  %v1027_v46 = vld [vmem:[%s4598_s11 + $0x8] sm:$0xff]  ;;  %v1028_v49 = vld [vmem:[%s4598_s11 + $0x10] sm:$0xff] }
  0x20   : > { %3448 = vmatprep.mubr.msk.f32.mxu1 %vm862_vm0, %v1026_v29  ;;  %v1029_v51 = vld [vmem:[%s4598_s11 + $0x18] sm:$0xff]  ;;  %v3818_v52 = vmov 0.0   ;;  %v1030_v53 = vld [vmem:[%s4598_s11 + $0x20] sm:$0xff]  ;;  %v1031_v54 = vld [vmem:[%s4598_s11 + $0x28] sm:$0xff]  ;;  %v3819_v58 = vmov 0   ;;  %vm3821_vm2 = vmmov 0  }
  0x21   : > { %s4615_s2 = sshll.u32 %s3990_s26, 3  ;;  %s4003_s24 = sshll.u32 %s3990_s26, 5  ;;  %974 = vmatprep.mubr.f32.mxu0 %v3818_v52  ;;  %v1032_v55 = vld [vmem:[%s4598_s11 + $0x30] sm:$0xff]  ;;  %v1033_v56 = vld [vmem:[%s4598_s11 + $0x38] sm:$0xff]  ;;  %3705 = vset.pattern.permute.xlu1 %v3819_v58  ;;  %v850_v60 = vld [vmem:[%s4599_s12] sm:$0xff]  ;;  %vm2474_vm4 = vcmask 97280  }
  0x22   : > { %s781_s5 = scalar_lea.vmem %s4632_s1, %s4615_s2  ;;  %s786_s3 = scalar_lea.vmem %s4633_s25, %s4003_s24  ;;  %v894_v30 = vld [vmem:[%s4634_s9 + $0x38] sm:$0xff]  ;;  %v893_v32 = vld [vmem:[%s4634_s9 + $0x30] sm:$0xff]  ;;  %v892_v36 = vld [vmem:[%s4634_s9 + $0x28] sm:$0xff]  ;;  %3706 = vset.pattern.permute.xlu0 %v3819_v58  ;;  %vm2621_vm8 = vcmask 1043456   ;;  %vm2988_vm9 = vcmask 523264  }
  0x23   : > { %v3998_v0 = vld [vmem:[%s781_s5] sm:$0xff]  ;;  %v818_v3 = vld [vmem:[%s786_s3 + $0x8] sm:$0xff]  ;;  %v819_v8 = vld [vmem:[%s786_s3 + $0x10] sm:$0xff]  ;;  %934 = vmatprep.subr.mxu0 %v894_v30  ;;  %s3659_s29 = smul.u32 96, %s3990_s26  ;;  %s4637_s1 = sld [smem:[#allocation15_spill]] }
  0x24   : > { %v863_v1 = vsel %vm862_vm0, %v3998_v0, 0.0  ;;  %v817_v2 = vld [vmem:[%s786_s3] sm:$0xff]  ;;  %v989_v6 = vsel %vm987_vm1, %v818_v3, 0.0  ;;  %v991_v10 = vsel %vm987_vm1, %v819_v8, 0.0  ;;  %v820_v12 = vld [vmem:[%s786_s3 + $0x18] sm:$0xff]  ;;  %935 = vmatpush1.msra.mxu0 %v893_v32  ;;  %v889_v42 = vld [vmem:[%s4634_s9 + $0x10] sm:$0xff] }
  0x25   : > { %864 = vadd.xlane.f32.xlu0 %v863_v1  ;;  %v988_v5 = vsel %vm987_vm1, %v817_v2, 0.0  ;;  %v993_v14 = vsel %vm987_vm1, %v820_v12, 0.0  ;;  %v891_v37 = vld [vmem:[%s4634_s9 + $0x20] sm:$0xff]  ;;  %v890_v38 = vld [vmem:[%s4634_s9 + $0x18] sm:$0xff]  ;;  %936 = vmatprep.subr.mxu0 %v892_v36  ;;  %v888_v44 = vld [vmem:[%s4634_s9 + $0x8] sm:$0xff]  ;;  %s4163_s0 = scalar_lea.vmem %s4636_s27, %s3659_s29  ;;  %s3822_s3 = smov 64  }
  0x26   : > { %v990_v9 = vadd.f32 %v989_v6, %v988_v5  ;;  %937 = vmatpush1.msra.mxu0 %v891_v37  ;;  %v887_v47 = vld [vmem:[%s4634_s9] sm:$0xff]  ;;  %v853_v57 = vld [vmem:[%s4599_s12 + $0x18] sm:$0xff]  ;;  %v852_v59 = vld [vmem:[%s4599_s12 + $0x10] sm:$0xff]  ;;  %v877_v5 = vlaneseq  ;;  %s3820_s9 = smov 96   ;;  %s3823_s29 = smov 32  }
  0x27   : > { %938 = vmatprep.subr.mxu0 %v890_v38  ;;  %1184 = vperm.xlu1 %3705, %v853_v57   ;;  %v854_v61 = vld [vmem:[%s4599_s12 + $0x20] sm:$0xff]  ;;  %v855_v62 = vld [vmem:[%s4599_s12 + $0x28] sm:$0xff]  ;;  %v856_v63 = vld [vmem:[%s4599_s12 + $0x30] sm:$0xff]  ;;  %s4638_s23 = sshll.u32 %s3990_s26, 3  ;;  %s775_s27 = sand.u32 1, %s3808_s28  }
  0x28   : > { %v992_v13 = vadd.f32 %v991_v10, %v990_v9  ;;  %939 = vmatpush1.msra.mxu0 %v889_v42  ;;  %v857_v1 = vld [vmem:[%s4599_s12 + $0x38] sm:$0xff]  ;;  %v4101_v6 = vshrl.u32 %v877_v5, 7  ;;  %v851_v58 = vld [vmem:[%s4599_s12 + $0x8] sm:$0xff] }
  0x29   : > { %940 = vmatprep.subr.mxu0 %v888_v44  ;;  %s4201_s5 = scalar_lea.vmem %s4637_s1, %s4003_s24 }
  0x2a   : > { %v994_v16 = vadd.f32 %v993_v14, %v992_v13  ;;  %941 = vmatpush1.msra.mxu0 %v887_v47  ;;  %v4112_v9 = vsub.s32 1, %v4101_v6 }
  0x2b   : > { %1179 = vperm.xlu1 %3705, %v852_v59   ;;  %v4137_v59 = vld [vmem:[%s4635_s10] sm:$0x3]  ;;  %s815_s10 = scalar_lea.vmem %s4594_s7, %s4003_s24 }
  0x2c   : > { %v995_v18 = vrot.slane %v994_v16, 4 }
  0x2e   : > { %v996_v19 = vadd.f32 %v995_v18, %v994_v16 }
  0x2f   : > { %1169 = vperm.xlu1 %3705, %v850_v60  }
  0x30   : > { %v997_v20 = vrot.slane %v996_v19, 2 }
  0x32   : > { %v998_v21 = vadd.f32 %v997_v20, %v996_v19 }
  0x33   : > { %1197 = vperm.xlu1 %3705, %v854_v61  }
  0x34   : > { %v999_v22 = vrot.slane %v998_v21, 1 }
  0x36   : > { %v1000_v23 = vadd.f32 %v999_v22, %v998_v21 }
  0x37   : > { %1202 = vperm.xlu1 %3705, %v855_v62  }
  0x38   : > { %v1001_v24 = vmul.f32 0.03125, %v1000_v23 }
  0x3a   : > { %v1005_v25 = vsub.f32 %v820_v12, %v1001_v24  ;;  %v1004_v26 = vsub.f32 %v819_v8, %v1001_v24  ;;  %v1003_v27 = vsub.f32 %v818_v3, %v1001_v24  ;;  %v1002_v28 = vsub.f32 %v817_v2, %v1001_v24  ;;  %v4109_v8 = vld [vmem:[%s4595_s8] sm:$0xff] }
  0x3b   : > { %1207 = vperm.xlu1 %3705, %v856_v63   ;;  %v885_v14 = vrot.slane %v4109_v8, %v4112_v9  ;;  %v1220_v63 = vld [vmem:[%s4604_s17 + $0x8] sm:$0xff] }
  0x3c   : > { %v1009_v31 = vmul.f32 %v1005_v25, %v1005_v25  ;;  %3440 = vmatprep.subr.mxu1 %v1005_v25  ;;  %v1008_v33 = vmul.f32 %v1004_v26, %v1004_v26  ;;  %v1007_v34 = vmul.f32 %v1003_v27, %v1003_v27  ;;  %v1006_v35 = vmul.f32 %v1002_v28, %v1002_v28 }
  0x3d   : > { %3441 = vmatpush3.msra.mxu1 %v1005_v25 }
  0x3e   : > { %3442 = vmatprep.subr.mxu1 %v1004_v26  ;;  %v1013_v39 = vsel %vm987_vm1, %v1008_v33, 0.0  ;;  %v1011_v40 = vsel %vm987_vm1, %v1007_v34, 0.0  ;;  %v1010_v41 = vsel %vm987_vm1, %v1006_v35, 0.0  ;;  %v1015_v45 = vsel %vm987_vm1, %v1009_v31, 0.0 }
  0x3f   : > { %3443 = vmatpush3.msra.mxu1 %v1004_v26  ;;  %v1012_v43 = vadd.f32 %v1011_v40, %v1010_v41  ;;  %1212 = vperm.xlu1 %3705, %v857_v1   ;;  %v1221_v1 = vld [vmem:[%s4604_s17 + $0x10] sm:$0xff] }
  0x40   : > { %3444 = vmatprep.subr.mxu1 %v1003_v27 }
  0x41   : > { %3445 = vmatpush3.msra.mxu1 %v1003_v27  ;;  %v1014_v48 = vadd.f32 %v1013_v39, %v1012_v43 }
  0x42   : > { %3446 = vmatprep.subr.mxu1 %v1002_v28 }
  0x43   : > { %3447 = vmatpush3.msra.mxu1 %v1002_v28  ;;  %v1016_v50 = vadd.f32 %v1015_v45, %v1014_v48 }
  0x44   : > { %3449 = vmatmul.mubr.msk.f32.vlgmr.msra.gmra.mxu1 %vm862_vm0, %v1027_v46 }
  0x45   : > { %3451 = vmatprep.mubr.msk.f32.mxu1 %vm862_vm0, %v1028_v49  ;;  %v1425_v49 = vld [vmem:[%s4605_s18] sm:$0xff] }
  0x46   : > { %3482 = vmatprep.subr.mxu1 %v1425_v49 }
  0x47   : > { %3483 = vmatpush3.msra.mxu1 %v1425_v49 }
  0x48   : > { %3452 = vmatmul.mubr.msk.f32.gmra.mxu1 %vm862_vm0, %v1029_v51 }
  0x49   : > { %3454 = vmatprep.mubr.msk.f32.mxu1 %vm862_vm0, %v1030_v53  ;;  %v1219_v53 = vld [vmem:[%s4604_s17] sm:$0xff] }
  0x4c   : > { %3455 = vmatmul.mubr.msk.f32.gmra.mxu1 %vm862_vm0, %v1031_v54 }
  0x4d   : > { %3457 = vmatprep.mubr.msk.f32.mxu1 %vm862_vm0, %v1032_v55 }
  0x50   : > { %3458 = vmatmul.mubr.msk.f32.gmra.mxu1 %vm862_vm0, %v1033_v56 }
  0xa2   : > { %v1185_v24 = vpop.permute.xlu1 %1184 }
  0xa6   : > { %v1180_v26 = vpop.permute.xlu1 %1179 }
  0xaa   : > { %v1170_v27 = vpop.permute.xlu1 %1169 }
  0xae   : > { %v865_v4 = vpop.xlane.xlu0 %864  ;;  %v1198_v29 = vpop.permute.xlu1 %1197 }
  0xaf   : > { %v867_v7 = vmul.f32 0.03125, %v865_v4 }
  0xb1   : > { %v4013_v11 = vsub.f32 %v3998_v0, %v867_v7  ;;  %v4104_v7 = vsub.s32 0, %v4101_v6 }
  0xb2   : > { %v1203_v37 = vpop.permute.xlu1 %1202 }
  0xb3   : > { %v869_v15 = vmul.f32 %v4013_v11, %v4013_v11  ;;  %v880_v10 = vrot.slane %v4109_v8, %v4104_v7  ;;  %v900_v60 = vrot.slane %v4137_v59, %v4104_v7 }
  0xb5   : > { %v870_v17 = vsel %vm862_vm0, %v869_v15, 0.0 }
  0xb6   : > { %871 = vadd.xlane.f32.xlu0 %v870_v17  ;;  %v1017_v17 = vrot.slane %v1016_v50, 4  ;;  %v1208_v46 = vpop.permute.xlu1 %1207 }
  0xb8   : > { %v1018_v18 = vadd.f32 %v1017_v17, %v1016_v50  ;;  %v822_v17 = vld [vmem:[%s4163_s0 + $0x8] sm:$0xff] }
  0xba   : > { %v1019_v19 = vrot.slane %v1018_v18, 2  ;;  %v1213_v56 = vpop.permute.xlu1 %1212 }
  0xbc   : > { %v1020_v20 = vadd.f32 %v1019_v19, %v1018_v18 }
  0xbe   : > { %v1021_v21 = vrot.slane %v1020_v20, 1 }
  0xc0   : > { %v1022_v22 = vadd.f32 %v1021_v21, %v1020_v20  ;;  %v831_v20 = vld [vmem:[%s4163_s0 + $0x50] sm:$0xff] }
  0xc2   : > { %v1023_v23 = vmul.f32 0.03125, %v1022_v22  ;;  %v824_v22 = vld [vmem:[%s4163_s0 + $0x18] sm:$0xff] }
  0xc4   : > { %v1024_v25 = vadd.f32 1e-05, %v1023_v23 }
  0xcc   : > { %1174 = vperm.xlu0 %3706, %v851_v58  }
 0x104   : > { %v3450_v28 = vpop.f32.mrf.mxu1 }
 0x106   : > { %v1124_v31 = vpop.f32.mrf.mxu1 }
 0x108   : > { %v3453_v33 = vpop.f32.mrf.mxu1 }
 0x10a   : > { %v1134_v36 = vpop.f32.mrf.mxu1 }
 0x10c   : > { %v3456_v40 = vpop.f32.mrf.mxu1 }
 0x10e   : > { %v1144_v43 = vpop.f32.mrf.mxu1 }
 0x110   : > { %v3459_v45 = vpop.f32.mrf.mxu1 }
 0x112   : > { %v1154_v51 = vpop.f32.mrf.mxu1 }
 0x13f   : > { %v872_v2 = vpop.xlane.xlu0 %871 }
 0x140   : > { %v873_v3 = vmul.f32 0.03125, %v872_v2  ;;  %v1222_v2 = vld [vmem:[%s4604_s17 + $0x18] sm:$0xff] }
 0x142   : > { %v874_v4 = vadd.f32 1e-05, %v873_v3 }
 0x144   : > { %3707 = vrsqrt.f32 %v874_v4 }
 0x145   : > { %3709 = vrsqrt.f32 %v1024_v25  ;;  %v830_v25 = vld [vmem:[%s4163_s0 + $0x48] sm:$0xff] }
 0x147   : > { %v1175_v3 = vpop.permute.xlu0 %1174 }
 0x151   : > { %v3708_v12 = vpop.eup %3707 }
 0x152   : > { %v876_v13 = vmul.f32 %v3708_v12, %v4013_v11  ;;  %v3710_v11 = vpop.eup %3709 }
 0x153   : > { %v1164_v30 = vmul.f32 %v3710_v11, %v3450_v28  ;;  %v1163_v32 = vmul.f32 %v3710_v11, %v1124_v31  ;;  %v1166_v35 = vmul.f32 %v3710_v11, %v3453_v33  ;;  %v1165_v39 = vmul.f32 %v3710_v11, %v1134_v36  ;;  %v829_v28 = vld [vmem:[%s4163_s0 + $0x40] sm:$0xff]  ;;  %v840_v36 = vld [vmem:[%s4201_s5 + $0x8] sm:$0xff] }
 0x154   : > { %v881_v15 = vmul.f32 %v880_v10, %v876_v13  ;;  %v1192_v42 = vmul.f32 %v3710_v11, %v3456_v40  ;;  %v1191_v44 = vmul.f32 %v3710_v11, %v1144_v43  ;;  %v1194_v50 = vmul.f32 %v3710_v11, %v3459_v45 }
 0x155   : > { %v1187_v34 = vadd.f32 %v1170_v27, %v1163_v32  ;;  %v1190_v38 = vadd.f32 %v1185_v24, %v1166_v35  ;;  %v1189_v41 = vadd.f32 %v1180_v26, %v1165_v39  ;;  %v1193_v54 = vmul.f32 %v3710_v11, %v1154_v51  ;;  %v823_v27 = vld [vmem:[%s4163_s0 + $0x10] sm:$0xff] }
 0x156   : > { %v886_v16 = vadd.f32 %v885_v14, %v881_v15  ;;  %v1216_v47 = vadd.f32 %v1203_v37, %v1192_v42  ;;  %v1215_v48 = vadd.f32 %v1198_v29, %v1191_v44  ;;  %v1218_v57 = vadd.f32 %v1213_v56, %v1194_v50  ;;  %v821_v15 = vld [vmem:[%s4163_s0] sm:$0xff] }
 0x157   : > { %v1217_v55 = vadd.f32 %v1208_v46, %v1193_v54  ;;  %v1188_v4 = vadd.f32 %v1175_v3, %v1164_v30  ;;  %v839_v42 = vld [vmem:[%s4201_s5] sm:$0xff] }
 0x158   : > { %3244 = vmatmul.mubr.msk.f32.vlgmr.msra.gmra.mxu0 %vm862_vm0, %v886_v16  ;;  %3484 = vmatprep.mubr.msk.f32.mxu1 %vm987_vm1, %v1215_v48  ;;  %v832_v16 = vld [vmem:[%s4163_s0 + $0x58] sm:$0xff] }
 0x159   : > { %3462 = vmatprep.mubr.msk.f32.mxu0 %vm987_vm1, %v1219_v53  ;;  %3485 = vmatmul.mubr.msk.f32.vlgmr.msra.gmra.mxu1 %vm987_vm1, %v1216_v47 }
 0x15a   : > { %3487 = vmatprep.mubr.msk.f32.mxu1 %vm987_vm1, %v1217_v55  ;;  %v841_v55 = vld [vmem:[%s4201_s5 + $0x10] sm:$0xff] }
 0x15d   : > { %3488 = vmatmul.mubr.msk.f32.gmra.mxu1 %vm987_vm1, %v1218_v57 }
 0x218   : > { %v976_v61 = vpop.f32.mrf.mxu0 }
 0x219   : > { %v4141_v62 = vadd.f32 %v976_v61, %v900_v60  ;;  %v3486_v5 = vpop.f32.mrf.mxu1 }
 0x21a   : > { %v4165_v12 = vpop.f32.mrf.mxu0  ;;  %v1510_v31 = vadd.f32 %v3486_v5, %v830_v25 }
 0x21b   : > { %1524 = vrot.lane.b32.xlu1 %v4141_v62, %s3820_s9  ;;  %3460 = vmatprep.subr.mxu0 %v4141_v62  ;;  %v1504_v10 = vpop.f32.mrf.mxu1  ;;  %s4639_s9 = sld [smem:[#allocation16_spill]] }
 0x21c   : > { %3461 = vmatpush3.msra.mxu0 %v4141_v62  ;;  %v1505_v33 = vadd.f32 %v1504_v10, %v829_v28 }
 0x21d   : > { %3463 = vmatmul.mubr.msk.f32.vlgmr.msra.gmra.mxu0 %vm987_vm1, %v1220_v63  ;;  %3468 = vmatprep.subr.mxu0 %v1190_v38  ;;  %v3489_v13 = vpop.f32.mrf.mxu1 }
 0x21e   : > { %3465 = vmatprep.mubr.msk.f32.mxu0 %vm987_vm1, %v1221_v1  ;;  %3469 = vmatpush3.msra.mxu0 %v1190_v38  ;;  %v1520_v23 = vadd.f32 %v3489_v13, %v832_v16 }
 0x21f   : > { %3470 = vmatprep.subr.mxu0 %v1189_v41  ;;  %v1514_v19 = vpop.f32.mrf.mxu1 }
 0x220   : > { %3471 = vmatpush3.msra.mxu0 %v1189_v41  ;;  %v1515_v11 = vadd.f32 %v1514_v19, %v831_v20 }
 0x221   : > { %3466 = vmatmul.mubr.msk.f32.gmra.mxu0 %vm987_vm1, %v1222_v2  ;;  %3472 = vmatprep.subr.mxu0 %v1188_v4  ;;  %v842_v2 = vld [vmem:[%s4201_s5 + $0x18] sm:$0xff]  ;;  %s810_s2 = scalar_lea.vmem %s4639_s9, %s4638_s23  ;;  %s3319_s9 = sshll.u32 %s3990_s26, 4 }
 0x222   : > { %3473 = vmatpush3.msra.mxu0 %v1188_v4  ;;  %s4641_s5 = sld [smem:[#allocation13_spill]]  ;;  %s3070_s23 = scalar_lea.sflag [#allocation3], %s775_s27 }
 0x223   : > { %3474 = vmatprep.subr.mxu0 %v1187_v34 }
 0x224   : > { %3475 = vmatpush3.msra.mxu0 %v1187_v34 }
 0x225   : > { %3490 = vmatprep.subr.mxu0 %v3818_v52 }
 0x28d   : > { %v1525_v34 = vpop.permute.xlu1 %1524 }
 0x2dd   : > { %v4167_v14 = vpop.f32.mrf.mxu0 }
 0x2de   : > { %v1321_v24 = vadd.f32 %v4167_v14, %v822_v17 }
 0x2df   : > { %v4172_v18 = vpop.f32.mrf.mxu0 }
 0x2e0   : > { %v1320_v21 = vadd.f32 %v4172_v18, %v821_v15 }
 0x2e1   : > { %v4179_v26 = vpop.f32.mrf.mxu0 }
 0x2e2   : > { %3476 = vmatprep.mubr.msk.f32.mxu0 %vm862_vm0, %v1320_v21  ;;  %v1323_v29 = vadd.f32 %v4179_v26, %v824_v22 }
 0x2e3   : > { %v4185_v30 = vpop.f32.mrf.mxu0  ;;  %3477 = vmatmul.mubr.msk.f32.vlgmr.msra.gmra.mxu0 %vm862_vm0, %v1321_v24 }
 0x2e4   : > { %v1322_v32 = vadd.f32 %v4185_v30, %v823_v27  ;;  %3491 = vmatpush3.msra.mxu0 %v1520_v23  ;;  %v843_v23 = vld [vmem:[%s810_s2] sm:$0xff]  ;;  %s3315_s2 = sshll.u32 %s3961_s4, 7  ;;  %s3824_s4 = smov [#allocation2]  }
 0x2e5   : > { %3492 = vmatprep.subr.mxu0 %v3818_v52  ;;  %s3760_s25 = sshll.u32 %s3824_s4, 4  ;;  %s3761_s25 = int_to_ptr.vmem [resolvable:$false] %s3760_s25 }
 0x2e6   : > { %3479 = vmatprep.mubr.msk.f32.mxu0 %vm862_vm0, %v1322_v32  ;;  %3493 = vmatpush3.msra.mxu0 %v1515_v11 }
 0x2e7   : > { %3480 = vmatmul.mubr.msk.f32.gmra.mxu0 %vm862_vm0, %v1323_v29  ;;  %3494 = vmatprep.subr.mxu0 %v3818_v52 }
 0x2e8   : > { %3495 = vmatpush3.msra.mxu0 %v1510_v31  ;;  %3498 = vmatprep.mubr.msk.f32.mxu0 %vm3821_vm2, %v3818_v52 }
 0x2e9   : > { %3496 = vmatprep.subr.mxu0 %v3818_v52 }
 0x2ea   : > { %3497 = vmatpush3.msra.mxu0 %v1505_v33 }
 0x2eb   : > { %3499 = vmatmul.mubr.msk.f32.vlgmr.msra.gmra.mxu0 %vm862_vm0, %v1525_v34 }
 0x3a3   : > { %v3478_v35 = vpop.f32.mrf.mxu0 }
 0x3a4   : > { %v1599_v37 = vmax.f32 %v3478_v35, 0.0  ;;  %v1607_v38 = vsub.f32 0.0, %v3478_v35 }
 0x3a5   : > { %v1406_v39 = vpop.f32.mrf.mxu0 }
 0x3a6   : > { %v1598_v40 = vmax.f32 %v1406_v39, 0.0  ;;  %v4204_v41 = vmul.f32 %v1599_v37, %v840_v36  ;;  %v1611_v43 = vmax.f32 %v1607_v38, 0.0  ;;  %v1606_v44 = vsub.f32 0.0, %v1406_v39 }
 0x3a7   : > { %v3481_v45 = vpop.f32.mrf.mxu0 }
 0x3a8   : > { %v1621_v46 = vsel %vm987_vm1, %v4204_v41, 0.0  ;;  %v4209_v48 = vmul.f32 %v1598_v40, %v839_v42  ;;  %v1610_v50 = vmax.f32 %v1606_v44, 0.0  ;;  %v4213_v54 = vmul.f32 %v1611_v43, %v840_v36 }
 0x3a9   : > { %1622 = vadd.xlane.f32.xlu0 %v1621_v46  ;;  %v1416_v47 = vpop.f32.mrf.mxu0  ;;  %v1601_v60 = vmax.f32 %v3481_v45, 0.0  ;;  %v1609_v3 = vsub.f32 0.0, %v3481_v45 }
 0x3aa   : > { %v1608_v49 = vsub.f32 0.0, %v1416_v47  ;;  %v1618_v51 = vsel %vm987_vm1, %v4209_v48, 0.0  ;;  %v1645_v61 = vsel %vm987_vm1, %v4213_v54, 0.0  ;;  %v4220_v63 = vmul.f32 %v1610_v50, %v839_v42 }
 0x3ab   : > { %v1594_v53 = vpop.f32.mrf.mxu0  ;;  %1619 = vadd.xlane.f32.xlu1 %v1618_v51  ;;  %v1600_v4 = vmax.f32 %v1416_v47, 0.0  ;;  %v4227_v10 = vmul.f32 %v1601_v60, %v842_v2  ;;  %v1613_v13 = vmax.f32 %v1609_v3, 0.0 }
 0x3ac   : > { %v1612_v56 = vmax.f32 %v1608_v49, 0.0  ;;  %v1642_v5 = vsel %vm987_vm1, %v4220_v63, 0.0  ;;  %v1868_v21 = vsub.f32 0.0, %v1594_v53  ;;  %v1866_v27 = vmax.f32 %v1594_v53, 0.0 }
 0x3ad   : > { %v3500_v57 = vpop.f32.mrf.mxu0  ;;  %v1627_v15 = vsel %vm987_vm1, %v4227_v10, 0.0  ;;  %v4231_v16 = vmul.f32 %v1600_v4, %v841_v55  ;;  %v4235_v19 = vmul.f32 %v1613_v13, %v842_v2 }
 0x3ae   : > { %v4216_v58 = vmul.f32 %v1612_v56, %v841_v55  ;;  %v1869_v22 = vmax.f32 %v1868_v21, 0.0  ;;  %v4250_v11 = vmul.f32 %v1866_v27, %v843_v23  ;;  %v826_v21 = vld [vmem:[%s4163_s0 + $0x28] sm:$0xff] }
 0x3af   : > { %1646 = vadd.xlane.f32.xlu1 %v1645_v61  ;;  %v1624_v17 = vsel %vm987_vm1, %v4231_v16, 0.0  ;;  %v1651_v20 = vsel %vm987_vm1, %v4235_v19, 0.0 }
 0x3b0   : > { %v1648_v1 = vsel %vm987_vm1, %v4216_v58, 0.0  ;;  %v4246_v24 = vmul.f32 %v1869_v22, %v843_v23 }
 0x3b1   : > { %1649 = vadd.xlane.f32.xlu0 %v1648_v1 }
 0x3b2   : > { %v1877_v25 = vsel %vm862_vm0, %v4246_v24, 0.0 }
 0x3b3   : > { %1643 = vadd.xlane.f32.xlu1 %v1642_v5 }
 0x3b7   : > { %1628 = vadd.xlane.f32.xlu1 %v1627_v15  ;;  %v828_v15 = vld [vmem:[%s4163_s0 + $0x38] sm:$0xff] }
 0x3bb   : > { %1625 = vadd.xlane.f32.xlu1 %v1624_v17  ;;  %v827_v17 = vld [vmem:[%s4163_s0 + $0x30] sm:$0xff] }
 0x3bc   : > { %v1326_v23 = vadd.f32 %v4185_v30, %v827_v17 }
 0x3bf   : > { %1652 = vadd.xlane.f32.xlu1 %v1651_v20  ;;  %v1327_v20 = vadd.f32 %v4179_v26, %v828_v15  ;;  %v2049_v15 = vsub.s32 2, %v4101_v6 }
 0x3c1   : > { %v2050_v17 = vrot.slane %v4109_v8, %v2049_v15 }
 0x3c7   : > { %1666 = vrot.lane.b32.xlu0 %v4141_v62, %s3822_s3  ;;  %s796_s3 = scalar_lea.vmem %s4641_s5, %s3319_s9  ;;  %s3230_s9 = sshll.u32 %s775_s27, 3 }
 0x3d0   : > { %1766 = vrot.lane.b32.xlu1 %v4141_v62, %s3823_s29  ;;  %v1871_v62 = vsel %vm862_vm0, %v4250_v11, 0.0 }
 0x3e6   : > { %1878 = vadd.xlane.f32.xlu0 %v1877_v25 }
 0x3f4   : > { %1872 = vadd.xlane.f32.xlu1 %v1871_v62  ;;  %v825_v62 = vld [vmem:[%s4163_s0 + $0x20] sm:$0xff]  ;;  %s4640_s0 = sld [smem:[#allocation14_spill]] }
 0x3fa   : > { %s801_s1 = scalar_lea.vmem %s4640_s0, %s4003_s24  ;;  %s777_s0 = scalar_lea.vmem [#allocation2], %s3230_s9 }
 0x3fb   : > { %s3083_s5 = sshll.u32 %s777_s0, 4  ;;  %s3084_s5 = int_to_ptr.vmem [resolvable:$true] %s3083_s5 }
 0x3fc   : > { %s3756_s26 = scalar_lea.vmem %s3084_s5, 128  ;;  %p3763_p0 = scmp.lt.s32.totalorder %s3084_s5, %s3761_s25 }
 0x3fd   : > { %p3757_p11 = scmp.ne.s32.totalorder %s3084_s5, %s3756_s26 }
 0x3ff   : > { %p3758_p12 = pnand %p3757_p11, %p3978_p5 }
 0x401   : > { %p3759_p13 = pneg %p3758_p12 }
 0x432   : > { %v1623_v28 = vpop.xlane.xlu0 %1622 }
 0x433   : > { %v1631_v29 = vadd.f32 1e-09, %v1623_v28 }
 0x434   : > { %v1620_v31 = vpop.xlane.xlu1 %1619 }
 0x435   : > { %v1630_v32 = vadd.f32 1e-09, %v1620_v31  ;;  %3711 = vrcp.f32 %v1631_v29  ;;  %v1325_v29 = vadd.f32 %v4167_v14, %v826_v21 }
 0x437   : > { %3713 = vrcp.f32 %v1630_v32 }
 0x438   : > { %v1647_v33 = vpop.xlane.xlu1 %1646 }
 0x439   : > { %v1655_v34 = vadd.f32 1e-09, %v1647_v33 }
 0x43a   : > { %v1650_v35 = vpop.xlane.xlu0 %1649 }
 0x43b   : > { %v1656_v36 = vadd.f32 1e-09, %v1650_v35  ;;  %3715 = vrcp.f32 %v1655_v34  ;;  %v1324_v35 = vadd.f32 %v4172_v18, %v825_v62 }
 0x43c   : > { %v1644_v37 = vpop.xlane.xlu1 %1643 }
 0x43d   : > { %v1654_v38 = vadd.f32 1e-09, %v1644_v37  ;;  %3717 = vrcp.f32 %v1656_v36 }
 0x43e   : > { %v1667_v39 = vpop.permute.xlu0 %1666 }
 0x43f   : > { %3501 = vmatprep.subr.mxu0 %v1667_v39  ;;  %3719 = vrcp.f32 %v1654_v38 }
 0x440   : > { %3502 = vmatpush3.msra.mxu0 %v1667_v39  ;;  %v1629_v40 = vpop.xlane.xlu1 %1628 }
 0x441   : > { %3517 = vmatprep.subr.mxu0 %v3818_v52  ;;  %v1633_v42 = vadd.f32 1e-09, %v1629_v40 }
 0x442   : > { %v3712_v43 = vpop.eup %3711 }
 0x443   : > { %3721 = vrcp.f32 %v1633_v42  ;;  %v1639_v49 = vmul.f32 %v3712_v43, %v4204_v41 }
 0x444   : > { %v3714_v44 = vpop.eup %3713  ;;  %v1626_v45 = vpop.xlane.xlu1 %1625 }
 0x445   : > { %v1632_v46 = vadd.f32 1e-09, %v1626_v45  ;;  %v1638_v47 = vmul.f32 %v3714_v44, %v4209_v48 }
 0x447   : > { %3723 = vrcp.f32 %v1632_v46  ;;  %3503 = vmatprep.mubr.msk.f32.mxu0 %vm987_vm1, %v1638_v47 }
 0x448   : > { %3504 = vmatmul.mubr.msk.f32.vlgmr.msra.gmra.mxu0 %vm987_vm1, %v1639_v49  ;;  %v1653_v50 = vpop.xlane.xlu1 %1652  ;;  %v3716_v53 = vpop.eup %3715 }
 0x449   : > { %v1657_v51 = vadd.f32 1e-09, %v1653_v50  ;;  %v1663_v48 = vmul.f32 %v3716_v53, %v4213_v54 }
 0x44a   : > { %v3718_v55 = vpop.eup %3717 }
 0x44b   : > { %3725 = vrcp.f32 %v1657_v51  ;;  %v1664_v41 = vmul.f32 %v3718_v55, %v4216_v58 }
 0x44c   : > { %v3720_v56 = vpop.eup %3719  ;;  %v1767_v57 = vpop.permute.xlu1 %1766 }
 0x44d   : > { %3509 = vmatprep.subr.mxu1 %v1767_v57  ;;  %v1662_v60 = vmul.f32 %v3720_v56, %v4220_v63 }
 0x44e   : > { %3510 = vmatpush3.msra.mxu1 %v1767_v57 }
 0x44f   : > { %3511 = vmatprep.mubr.msk.f32.mxu1 %vm987_vm1, %v1662_v60  ;;  %3528 = vmatprep.subr.mxu1 %v3818_v52  ;;  %v858_v60 = vld [vmem:[%s4599_s12 + $0x40] sm:$0xff] }
 0x450   : > { %3512 = vmatmul.mubr.msk.f32.vlgmr.msra.gmra.mxu1 %vm987_vm1, %v1663_v48  ;;  %v3722_v61 = vpop.eup %3721 }
 0x451   : > { %3514 = vmatprep.mubr.msk.f32.mxu1 %vm987_vm1, %v1664_v41  ;;  %v1641_v63 = vmul.f32 %v3722_v61, %v4227_v10 }
 0x454   : > { %v3724_v1 = vpop.eup %3723 }
 0x455   : > { %v1640_v2 = vmul.f32 %v3724_v1, %v4231_v16 }
 0x457   : > { %3506 = vmatprep.mubr.msk.f32.mxu0 %vm987_vm1, %v1640_v2  ;;  %v860_v2 = vld [vmem:[%s4599_s12 + $0x50] sm:$0xff] }
 0x458   : > { %v3726_v54 = vpop.eup %3725  ;;  %3507 = vmatmul.mubr.msk.f32.gmra.mxu0 %vm987_vm1, %v1641_v63  ;;  %v859_v63 = vld [vmem:[%s4599_s12 + $0x48] sm:$0xff] }
 0x459   : > { %v1665_v58 = vmul.f32 %v3726_v54, %v4235_v19  ;;  %3525 = vmatprep.mubr.msk.f32.mxu0 %vm3821_vm2, %v3818_v52  ;;  %v2064_v54 = vld [vmem:[%s4600_s13 + $0x18] sm:$0xff] }
 0x45b   : > { %3515 = vmatmul.mubr.msk.f32.gmra.mxu1 %vm987_vm1, %v1665_v58  ;;  %v2063_v58 = vld [vmem:[%s4600_s13 + $0x10] sm:$0xff] }
 0x45c   : > { %3536 = vmatprep.mubr.msk.f32.mxu1 %vm3821_vm2, %v3818_v52 }
 0x46f   : > { %v1879_v4 = vpop.xlane.xlu0 %1878 }
 0x470   : > { %v1880_v10 = vadd.f32 1e-09, %v1879_v4  ;;  %v2061_v4 = vld [vmem:[%s4600_s13] sm:$0xff] }
 0x47d   : > { %v1873_v3 = vpop.xlane.xlu1 %1872 }
 0x47e   : > { %v1874_v5 = vadd.f32 1e-09, %v1873_v3  ;;  %v2062_v3 = vld [vmem:[%s4600_s13 + $0x8] sm:$0xff] }
 0x480   : > { %3727 = vrcp.f32 %v1874_v5 }
 0x481   : > { %3729 = vrcp.f32 %v1880_v10 }
 0x48d   : > { %v3728_v34 = vpop.eup %3727 }
 0x48e   : > { %v3730_v14 = vpop.eup %3729  ;;  %v1876_v38 = vmul.f32 %v3728_v34, %v4250_v11  ;;  %v904_v11 = vrot.slane %v4137_v59, %v4112_v9  ;;  %v2144_v34 = vld [vmem:[%s4606_s19 + $0x10] sm:$0xff] }
 0x48f   : > { %v1882_v40 = vmul.f32 %v3730_v14, %v4246_v24  ;;  %v3283_v14 = vld [vmem:[%s4600_s13 + $0x68] sm:$0xff] }
 0x490   : > { %v979_v42 = vadd.f32 %v4165_v12, %v904_v11  ;;  %v861_v12 = vld [vmem:[%s4599_s12 + $0x58] sm:$0xff] }
 0x492   : > { %v3245_v43 = vmul.f32 -1.442695, %v979_v42 }
 0x494   : > { %3731 = vpow2.f32 %v3245_v43 }
 0x4a1   : > { %v3732_v44 = vpop.eup %3731 }
 0x4a2   : > { %v984_v45 = vadd.f32 1.0, %v3732_v44 }
 0x4a4   : > { %3733 = vrcp.f32 %v984_v45 }
 0x4b1   : > { %v3734_v24 = vpop.eup %3733 }
 0x4b2   : > { %v2031_v50 = vsub.f32 1.0, %v3734_v24 }
 0x508   : > { %v3505_v13 = vpop.f32.mrf.mxu0 }
 0x509   : > { %v1753_v26 = vadd.f32 %v3505_v13, %v1325_v29 }
 0x50a   : > { %v1747_v19 = vpop.f32.mrf.mxu0 }
 0x50b   : > { %v1748_v30 = vadd.f32 %v1747_v19, %v1324_v35 }
 0x510   : > { %v3513_v16 = vpop.f32.mrf.mxu1 }
 0x511   : > { %v1853_v39 = vadd.f32 %v3513_v16, %v1325_v29  ;;  %v2054_v16 = vsub.s32 3, %v4101_v6 }
 0x512   : > { %v1847_v25 = vpop.f32.mrf.mxu1 }
 0x513   : > { %v1848_v18 = vadd.f32 %v1847_v25, %v1324_v35  ;;  %v2055_v21 = vrot.slane %v4109_v8, %v2054_v16  ;;  %v2142_v25 = vld [vmem:[%s4606_s19] sm:$0xff]  ;;  %v837_v35 = vld [vmem:[%s801_s1 + $0x10] sm:$0xff] }
 0x518   : > { %v3508_v22 = vpop.f32.mrf.mxu0 }
 0x519   : > { %v1763_v27 = vadd.f32 %v3508_v22, %v1327_v20 }
 0x51a   : > { %v1757_v28 = vpop.f32.mrf.mxu0 }
 0x51b   : > { %v1758_v31 = vadd.f32 %v1757_v28, %v1326_v23  ;;  %v3516_v32 = vpop.f32.mrf.mxu1  ;;  %3518 = vmatpush3.msra.mxu0 %v1763_v27  ;;  %v2067_v27 = vsub.s32 6, %v4101_v6 }
 0x51c   : > { %v1863_v33 = vadd.f32 %v3516_v32, %v1327_v20  ;;  %3519 = vmatprep.subr.mxu0 %v3818_v52  ;;  %v2143_v32 = vld [vmem:[%s4606_s19 + $0x8] sm:$0xff] }
 0x51d   : > { %v1857_v36 = vpop.f32.mrf.mxu1  ;;  %3520 = vmatpush3.msra.mxu0 %v1758_v31  ;;  %v2068_v62 = vrot.slane %v4109_v8, %v2067_v27 }
 0x51e   : > { %v1858_v37 = vadd.f32 %v1857_v36, %v1326_v23  ;;  %3521 = vmatprep.subr.mxu0 %v3818_v52  ;;  %3529 = vmatpush3.msra.mxu1 %v1863_v33  ;;  %v838_v33 = vld [vmem:[%s801_s1 + $0x18] sm:$0xff]  ;;  %v836_v36 = vld [vmem:[%s801_s1 + $0x8] sm:$0xff] }
 0x51f   : > { %3522 = vmatpush3.msra.mxu0 %v1753_v26  ;;  %3530 = vmatprep.subr.mxu1 %v3818_v52  ;;  %v2145_v26 = vld [vmem:[%s4606_s19 + $0x18] sm:$0xff] }
 0x520   : > { %3523 = vmatprep.subr.mxu0 %v3818_v52  ;;  %3531 = vmatpush3.msra.mxu1 %v1858_v37  ;;  %v3282_v37 = vld [vmem:[%s4600_s13 + $0x60] sm:$0xff] }
 0x521   : > { %3524 = vmatpush3.msra.mxu0 %v1748_v30  ;;  %3532 = vmatprep.subr.mxu1 %v3818_v52  ;;  %v835_v30 = vld [vmem:[%s801_s1] sm:$0xff]  ;;  %s3081_s1 = scalar_lea.hbm %s4609_s22, %s3315_s2 }
 0x522   : > { %3526 = vmatmul.mubr.msk.f32.vlgmr.msra.gmra.mxu0 %vm862_vm0, %v1876_v38  ;;  %3533 = vmatpush3.msra.mxu1 %v1853_v39  ;;  %v3284_v38 = vld [vmem:[%s4600_s13 + $0x70] sm:$0xff]  ;;  %v3285_v39 = vld [vmem:[%s4600_s13 + $0x78] sm:$0xff] }
 0x523   : > { %3534 = vmatprep.subr.mxu1 %v3818_v52  ;;  %3539 = vmatprep.subr.mxu0 %v3818_v52 }
 0x524   : > { %3535 = vmatpush3.msra.mxu1 %v1848_v18  ;;  %3547 = vmatprep.mubr.msk.f32.mxu0 %vm3821_vm2, %v3818_v52 }
 0x525   : > { %3537 = vmatmul.mubr.msk.f32.vlgmr.msra.gmra.mxu1 %vm862_vm0, %v1882_v40  ;;  %3540 = vmatpush3.msra.mxu0 %v2064_v54  ;;  %v4380_v40 = vld [vmem:[%s4608_s21] sm:$0xff]  ;;  %v3295_v54 = vld [vmem:[%s4600_s13 + $0x28] sm:$0xff] }
 0x526   : > { %3541 = vmatprep.subr.mxu0 %v3818_v52  ;;  %3552 = vmatprep.mubr.msk.f32.mxu1 %vm987_vm1, %v2142_v25 }
 0x527   : > { %3542 = vmatpush3.msra.mxu0 %v2063_v58  ;;  %v833_v58 = vld [vmem:[%s796_s3] sm:$0xff] }
 0x528   : > { %3543 = vmatprep.subr.mxu0 %v3818_v52 }
 0x529   : > { %3544 = vmatpush3.msra.mxu0 %v2062_v3  ;;  %v3294_v3 = vld [vmem:[%s4600_s13 + $0x20] sm:$0xff] }
 0x52a   : > { %3545 = vmatprep.subr.mxu0 %v3818_v52 }
 0x52b   : > { %3546 = vmatpush3.msra.mxu0 %v2061_v4  ;;  %v834_v4 = vld [vmem:[%s796_s3 + $0x8] sm:$0xf] }
 0x5e2   : > { %v1952_v46 = vpop.f32.mrf.mxu0 }
 0x5e3   : > { %v2029_v47 = vmul.f32 %v3734_v24, %v1952_v46 }
 0x5e4   : > { %v3527_v49 = vpop.f32.mrf.mxu0 }
 0x5e5   : > { %v2030_v51 = vadd.f32 %v2029_v47, %v3998_v0  ;;  %v2025_v53 = vpop.f32.mrf.mxu1 }
 0x5e6   : > { %v2032_v55 = vmul.f32 %v2031_v50, %v2025_v53 }
 0x5e7   : > { %v3538_v56 = vpop.f32.mrf.mxu1 }
 0x5e8   : > { %v4301_v57 = vadd.f32 %v2032_v55, %v2030_v51 }
 0x5ea   : > { %v2034_v59 = vsel %vm862_vm0, %v4301_v57, 0.0 }
 0x5eb   : > { %2035 = vadd.xlane.f32.xlu0 %v2034_v59 }
 0x601   : > { %2269 = vperm.xlu0 %3706, %v861_v12   ;;  %v4387_v12 = vld [vmem:[%s4608_s21 + $0x8] sm:$0xff] }
 0x605   : > { %2254 = vperm.xlu0 %3706, %v858_v60   ;;  %v4392_v60 = vld [vmem:[%s4608_s21 + $0x10] sm:$0xff] }
 0x674   : > { %v2036_v0 = vpop.xlane.xlu0 %2035 }
 0x675   : > { %v2037_v48 = vmul.f32 0.03125, %v2036_v0 }
 0x677   : > { %v2038_v41 = vsub.f32 %v4301_v57, %v2037_v48 }
 0x679   : > { %v2039_v61 = vmul.f32 %v2038_v41, %v2038_v41 }
 0x67b   : > { %v2040_v1 = vsel %vm862_vm0, %v2039_v61, 0.0 }
 0x67c   : > { %2041 = vadd.xlane.f32.xlu1 %v2040_v1  ;;  %v2270_v47 = vpop.permute.xlu0 %2269 }
 0x680   : > { %v2255_v59 = vpop.permute.xlu0 %2254 }
 0x68d   : > { %2264 = vperm.xlu1 %3705, %v860_v2   ;;  %v3297_v2 = vld [vmem:[%s4600_s13 + $0x38] sm:$0xff] }
 0x691   : > { %2259 = vperm.xlu1 %3705, %v859_v63   ;;  %v3296_v63 = vld [vmem:[%s4600_s13 + $0x30] sm:$0xff] }
 0x705   : > { %v2042_v5 = vpop.xlane.xlu1 %2041 }
 0x706   : > { %v2043_v10 = vmul.f32 0.03125, %v2042_v5  ;;  %v845_v5 = vld [vmem:[%s815_s10 + $0x8] sm:$0xff] }
 0x707   : > { %vm2467_vm3 = vcmp.lt.f32.partialorder %v845_v5, 0.5  ;;  %v3308_v5 = vld [vmem:[%s4600_s13 + $0x50] sm:$0xff] }
 0x708   : > { %v2044_v13 = vadd.f32 1e-05, %v2043_v10  ;;  %v844_v10 = vld [vmem:[%s815_s10] sm:$0xff] }
 0x709   : > { %v2265_v24 = vpop.permute.xlu1 %2264  ;;  %vm2466_vm5 = vcmp.lt.f32.partialorder %v844_v10, 0.5  ;;  %v3307_v10 = vld [vmem:[%s4600_s13 + $0x48] sm:$0xff] }
 0x70a   : > { %3735 = vrsqrt.f32 %v2044_v13  ;;  %v847_v13 = vld [vmem:[%s815_s10 + $0x18] sm:$0xff] }
 0x70b   : > { %vm2469_vm6 = vcmp.lt.f32.partialorder %v847_v13, 0.5 }
 0x70d   : > { %v2260_v55 = vpop.permute.xlu1 %2259 }
 0x717   : > { %v3736_v19 = vpop.eup %3735 }
 0x718   : > { %v2046_v20 = vmul.f32 %v3736_v19, %v2038_v41  ;;  %v4398_v41 = vld [vmem:[%s4608_s21 + $0x18] sm:$0xff] }
 0x71a   : > { %v2051_v22 = vmul.f32 %v2050_v17, %v2046_v20  ;;  %v846_v17 = vld [vmem:[%s815_s10 + $0x10] sm:$0xff]  ;;  %s3762_s10 = scalar_lea.vmem %s3761_s25, 256 }
 0x71b   : > { %vm2468_vm7 = vcmp.lt.f32.partialorder %v846_v17, 0.5  ;;  %p3764_p1 = scmp.lt.s32.totalorder %s3762_s10, %s3756_s26 }
 0x71c   : > { %v2056_v23 = vadd.f32 %v2055_v21, %v2051_v22 }
 0x71d   : > { %p3765_p2 = por %p3764_p1, %p3763_p0 }
 0x71e   : > { %3548 = vmatmul.mubr.msk.f32.vlgmr.msra.gmra.mxu0 %vm862_vm0, %v2056_v23 }
 0x71f   : > { %p3766_p3 = pnand %p3765_p2, %p3759_p13 }
 0x7de   : > { %v2138_v28 = vpop.f32.mrf.mxu0 }
 0x7df   : > { %v2139_v29 = vadd.f32 %v2138_v28, %v2068_v62 }
 0x7e0   : > { %v3549_v31 = vpop.f32.mrf.mxu0 }
 0x7e1   : > { %3550 = vmatprep.subr.mxu1 %v2139_v29 }
 0x7e2   : > { %3551 = vmatpush3.msra.mxu1 %v2139_v29 }
 0x7e3   : > { %3553 = vmatmul.mubr.msk.f32.vlgmr.msra.gmra.mxu1 %vm987_vm1, %v2143_v32  ;;  %3558 = vmatprep.subr.mxu1 %v838_v33 }
 0x7e4   : > { %3559 = vmatpush3.msra.mxu1 %v838_v33  ;;  %3555 = vmatprep.mubr.msk.f32.mxu1 %vm987_vm1, %v2144_v34 }
 0x7e5   : > { %3560 = vmatprep.subr.mxu1 %v837_v35 }
 0x7e6   : > { %3561 = vmatpush3.msra.mxu1 %v837_v35 }
 0x7e7   : > { %3556 = vmatmul.mubr.msk.f32.gmra.mxu1 %vm987_vm1, %v2145_v26  ;;  %3562 = vmatprep.subr.mxu1 %v836_v36 }
 0x7e8   : > { %3563 = vmatpush3.msra.mxu1 %v836_v36  ;;  %3566 = vmatprep.mubr.msk.f32.mxu1 %vm862_vm0, %v3282_v37 }
 0x7e9   : > { %3564 = vmatprep.subr.mxu1 %v835_v30 }
 0x7ea   : > { %3565 = vmatpush3.msra.mxu1 %v835_v30 }
 0x7eb   : > { %3567 = vmatmul.mubr.msk.f32.vlgmr.msra.gmra.mxu1 %vm862_vm0, %v3283_v14  ;;  %3586 = vmatprep.subr.mxu1 %v3297_v2 }
 0x7ec   : > { %3569 = vmatprep.mubr.msk.f32.mxu1 %vm862_vm0, %v3284_v38  ;;  %3587 = vmatpush3.msra.mxu1 %v3297_v2 }
 0x7ed   : > { %3588 = vmatprep.subr.mxu1 %v3296_v63 }
 0x7ee   : > { %3589 = vmatpush3.msra.mxu1 %v3296_v63 }
 0x7ef   : > { %3570 = vmatmul.mubr.msk.f32.gmra.mxu1 %vm862_vm0, %v3285_v39  ;;  %3590 = vmatprep.subr.mxu1 %v3295_v54 }
 0x7f0   : > { %3594 = vmatprep.mubr.msk.f32.mxu1 %vm862_vm0, %v833_v58  ;;  %3591 = vmatpush3.msra.mxu1 %v3295_v54 }
 0x7f1   : > { %3592 = vmatprep.subr.mxu1 %v3294_v3 }
 0x7f2   : > { %3593 = vmatpush3.msra.mxu1 %v3294_v3 }
 0x7f3   : > { %3595 = vmatmul.mubr.msk.f32.vlgmr.msra.gmra.mxu1 %vm862_vm0, %v834_v4  ;;  %v3309_v4 = vld [vmem:[%s4600_s13 + $0x58] sm:$0xff] }
 0x8a3   : > { %v3554_v18 = vpop.f32.mrf.mxu1 }
 0x8a4   : > { %v2244_v48 = vmul.f32 %v3554_v18, %v4387_v12 }
 0x8a5   : > { %v2224_v11 = vpop.f32.mrf.mxu1 }
 0x8a6   : > { %v2243_v42 = vmul.f32 %v2224_v11, %v4380_v40 }
 0x8a7   : > { %v3557_v43 = vpop.f32.mrf.mxu1 }
 0x8a8   : > { %3580 = vmatprep.mubr.msk.f32.mxu0 %vm862_vm0, %v2243_v42  ;;  %v2246_v1 = vmul.f32 %v3557_v43, %v4398_v41 }
 0x8a9   : > { %v2234_v44 = vpop.f32.mrf.mxu1 }
 0x8aa   : > { %v2245_v61 = vmul.f32 %v2234_v44, %v4392_v60 }
 0x8ab   : > { %v3568_v45 = vpop.f32.mrf.mxu1 }
 0x8ac   : > { %v2356_v56 = vadd.f32 %v3568_v45, %v2260_v55 }
 0x8ad   : > { %v2350_v46 = vpop.f32.mrf.mxu1 }
 0x8ae   : > { %v2351_v0 = vadd.f32 %v2350_v46, %v2255_v59 }
 0x8af   : > { %v3571_v49 = vpop.f32.mrf.mxu1 }
 0x8b0   : > { %v2366_v50 = vadd.f32 %v3571_v49, %v2270_v47  ;;  %v2526_v47 = vsub.s32 7, %v4101_v6 }
 0x8b1   : > { %v2360_v51 = vpop.f32.mrf.mxu1 }
 0x8b2   : > { %v2361_v53 = vadd.f32 %v2360_v51, %v2265_v24  ;;  %3572 = vmatprep.subr.mxu0 %v2366_v50 }
 0x8b3   : > { %3573 = vmatpush3.msra.mxu0 %v2366_v50  ;;  %v3596_v49 = vpop.f32.mrf.mxu1  ;;  %v2527_v50 = vrot.slane %v4109_v8, %v2526_v47 }
 0x8b4   : > { %3574 = vmatprep.subr.mxu0 %v2361_v53 }
 0x8b5   : > { %3575 = vmatpush3.msra.mxu0 %v2361_v53  ;;  %v2600_v51 = vpop.f32.mrf.mxu1  ;;  %v2606_v53 = vadd.f32 %v3596_v49, %v2527_v50 }
 0x8b6   : > { %3576 = vmatprep.subr.mxu0 %v2356_v56  ;;  %v2601_v55 = vadd.f32 %v2600_v51, %v2527_v50 }
 0x8b7   : > { %3577 = vmatpush3.msra.mxu0 %v2356_v56  ;;  %3597 = vmatprep.subr.msk.mxu1 %vm2621_vm8, %v2606_v53 }
 0x8b8   : > { %3578 = vmatprep.subr.mxu0 %v2351_v0  ;;  %3598 = vmatpush3.msk.msra.mxu1 %vm2621_vm8, %v2606_v53 }
 0x8b9   : > { %3579 = vmatpush3.msra.mxu0 %v2351_v0  ;;  %3599 = vmatprep.subr.mxu1 %v2601_v55 }
 0x8ba   : > { %3581 = vmatmul.mubr.msk.f32.vlgmr.msra.gmra.mxu0 %vm862_vm0, %v2244_v48  ;;  %3618 = vmatprep.subr.mxu0 %v3818_v52 }
 0x8bb   : > { %3583 = vmatprep.mubr.msk.f32.mxu0 %vm862_vm0, %v2245_v61  ;;  %3600 = vmatpush3.msra.mxu1 %v2601_v55  ;;  %v2982_v55 = vld [vmem:[%s4603_s16 + $0x10] sm:$0xff] }
 0x8bc   : > { %3607 = vmatprep.subr.mxu1 %v3818_v52  ;;  %3619 = vmatpush3.msra.mxu0 %v3309_v4 }
 0x8bd   : > { %3620 = vmatprep.subr.mxu0 %v3818_v52 }
 0x8be   : > { %3584 = vmatmul.mubr.msk.f32.gmra.mxu0 %vm862_vm0, %v2246_v1 }
 0x8bf   : > { %3626 = vmatprep.mubr.msk.f32.mxu0 %vm3821_vm2, %v3818_v52  ;;  %3621 = vmatpush3.msra.mxu0 %v3308_v5 }
 0x8c0   : > { %3622 = vmatprep.subr.mxu0 %v3818_v52 }
 0x8c1   : > { %3623 = vmatpush3.msra.mxu0 %v3307_v10 }
 0x8c2   : > { %3624 = vmatprep.subr.mxu0 %v3818_v52 }
 0x97a   : > { %v3582_v15 = vpop.f32.mrf.mxu0 }
 0x97b   : > { %v2471_v16 = vsel %vm2467_vm3, -10000.0, %v3582_v15 }
 0x97c   : > { %v2447_v19 = vpop.f32.mrf.mxu0  ;;  %v2478_v20 = vsel %vm2474_vm4, %v2471_v16, -inf }
 0x97d   : > { %v2470_v21 = vsel %vm2466_vm5, -10000.0, %v2447_v19  ;;  %2479 = vmax.xlane.f32.xlu0 %v2478_v20 }
 0x97e   : > { %v3585_v22 = vpop.f32.mrf.mxu0  ;;  %v2475_v23 = vsel %vm2474_vm4, %v2470_v21, -inf }
 0x97f   : > { %v2473_v25 = vsel %vm2469_vm6, -10000.0, %v3585_v22  ;;  %2476 = vmax.xlane.f32.xlu1 %v2475_v23  ;;  %v2714_v23 = vld [vmem:[%s4607_s20] sm:$0xff] }
 0x980   : > { %v2457_v27 = vpop.f32.mrf.mxu0  ;;  %v2484_v28 = vsel %vm2474_vm4, %v2473_v25, -inf }
 0x981   : > { %v2472_v62 = vsel %vm2468_vm7, -10000.0, %v2457_v27 }
 0x982   : > { %v2481_v29 = vsel %vm2474_vm4, %v2472_v62, -inf }
 0x983   : > { %2485 = vmax.xlane.f32.xlu1 %v2484_v28  ;;  %2482 = vmax.xlane.f32.xlu0 %v2481_v29 }
 0xa06   : > { %v2480_v31 = vpop.xlane.xlu0 %2479 }
 0xa07   : > { %v2488_v32 = vsub.f32 %v2471_v16, %v2480_v31 }
 0xa08   : > { %v2477_v33 = vpop.xlane.xlu1 %2476 }
 0xa09   : > { %v2493_v34 = vmul.f32 1.442695, %v2488_v32  ;;  %v2487_v35 = vsub.f32 %v2470_v21, %v2477_v33 }
 0xa0b   : > { %3737 = vpow2.f32 %v2493_v34  ;;  %v2491_v26 = vmul.f32 1.442695, %v2487_v35 }
 0xa0c   : > { %v2486_v36 = vpop.xlane.xlu1 %2485  ;;  %v2483_v37 = vpop.xlane.xlu0 %2482 }
 0xa0d   : > { %3739 = vpow2.f32 %v2491_v26  ;;  %v2490_v30 = vsub.f32 %v2473_v25, %v2486_v36  ;;  %v2489_v14 = vsub.f32 %v2472_v62, %v2483_v37  ;;  %v2896_v36 = vld [vmem:[%s4601_s14 + $0x8] sm:$0xff]  ;;  %v2895_v37 = vld [vmem:[%s4601_s14] sm:$0xff] }
 0xa0f   : > { %v2497_v38 = vmul.f32 1.442695, %v2490_v30  ;;  %v2495_v39 = vmul.f32 1.442695, %v2489_v14  ;;  %v2987_v30 = vld [vmem:[%s4603_s16 + $0x38] sm:$0xff]  ;;  %v2986_v14 = vld [vmem:[%s4603_s16 + $0x30] sm:$0xff] }
 0xa11   : > { %3741 = vpow2.f32 %v2497_v38  ;;  %v2985_v38 = vld [vmem:[%s4603_s16 + $0x28] sm:$0xff] }
 0xa12   : > { %3743 = vpow2.f32 %v2495_v39  ;;  %v2984_v39 = vld [vmem:[%s4603_s16 + $0x20] sm:$0xff] }
 0xa18   : > { %v3738_v18 = vpop.eup %3737 }
 0xa19   : > { %v2502_v11 = vsel %vm2474_vm4, %v3738_v18, 0.0 }
 0xa1a   : > { %v3740_v42 = vpop.eup %3739  ;;  %2503 = vadd.xlane.f32.xlu1 %v2502_v11 }
 0xa1b   : > { %v2499_v43 = vsel %vm2474_vm4, %v3740_v42, 0.0 }
 0xa1c   : > { %2500 = vadd.xlane.f32.xlu0 %v2499_v43 }
 0xa1e   : > { %v3742_v44 = vpop.eup %3741 }
 0xa1f   : > { %v3744_v45 = vpop.eup %3743  ;;  %v2508_v24 = vsel %vm2474_vm4, %v3742_v44, 0.0 }
 0xa20   : > { %2509 = vadd.xlane.f32.xlu1 %v2508_v24  ;;  %v2505_v46 = vsel %vm2474_vm4, %v3744_v45, 0.0  ;;  %v3755_v24 = vld [vmem:[%s4595_s8] sm:$0xff] }
 0xa21   : > { %2506 = vadd.xlane.f32.xlu0 %v2505_v46 }
 0xaa3   : > { %v2504_v56 = vpop.xlane.xlu1 %2503 }
 0xaa4   : > { %3745 = vrcp.f32 %v2504_v56  ;;  %v2980_v56 = vld [vmem:[%s4603_s16] sm:$0xff] }
 0xaa5   : > { %v2501_v59 = vpop.xlane.xlu0 %2500 }
 0xaa6   : > { %3747 = vrcp.f32 %v2501_v59  ;;  %v3311_v59 = vld [vmem:[%s4602_s15] ss:$0 sm:$0xff] }
 0xaa9   : > { %v2510_v0 = vpop.xlane.xlu1 %2509 }
 0xaaa   : > { %3749 = vrcp.f32 %v2510_v0  ;;  %v2507_v48 = vpop.xlane.xlu0 %2506 }
 0xaab   : > { %3751 = vrcp.f32 %v2507_v48 }
 0xab1   : > { %v3746_v61 = vpop.eup %3745 }
 0xab2   : > { %v2516_v2 = vmul.f32 %v3746_v61, %v3738_v18  ;;  %v2983_v18 = vld [vmem:[%s4603_s16 + $0x18] sm:$0xff] }
 0xab3   : > { %v3748_v8 = vpop.eup %3747 }
 0xab4   : > { %v2515_v1 = vmul.f32 %v3748_v8, %v3740_v42 }
 0xab6   : > { %3601 = vmatprep.mubr.msk.f32.mxu1 %vm2474_vm4, %v2515_v1 }
 0xab7   : > { %v3750_v63 = vpop.eup %3749  ;;  %3602 = vmatmul.mubr.msk.f32.vlgmr.msra.gmra.mxu1 %vm2474_vm4, %v2516_v2 }
 0xab8   : > { %v3752_v54 = vpop.eup %3751  ;;  %v2518_v58 = vmul.f32 %v3750_v63, %v3742_v44  ;;  %v2887_v44 = vsub.s32 4, %v4101_v6 }
 0xab9   : > { %v2517_v3 = vmul.f32 %v3752_v54, %v3744_v45  ;;  %v2892_v45 = vsub.s32 5, %v4101_v6  ;;  %v2981_v6 = vld [vmem:[%s4603_s16 + $0x8] sm:$0xff] }
 0xaba   : > { %v2888_v46 = vrot.slane %v3755_v24, %v2887_v44 }
 0xabb   : > { %3604 = vmatprep.mubr.msk.f32.mxu1 %vm2474_vm4, %v2517_v3  ;;  %v2893_v50 = vrot.slane %v3755_v24, %v2892_v45 }
 0xabc   : > { %3605 = vmatmul.mubr.msk.f32.gmra.mxu1 %vm2474_vm4, %v2518_v58 }
 0xabd   : > { %3615 = vmatprep.mubr.msk.f32.mxu1 %vm3821_vm2, %v3818_v52 }
 0xb77   : > { %v3603_v13 = vpop.f32.mrf.mxu1 }
 0xb78   : > { %v2711_v21 = vmul.f32 %v3603_v13, %v4387_v12  ;;  %v3306_v12 = vld [vmem:[%s4600_s13 + $0x40] sm:$0xff] }
 0xb79   : > { %v2691_v15 = vpop.f32.mrf.mxu1  ;;  %3625 = vmatpush3.msra.mxu0 %v3306_v12 }
 0xb7a   : > { %v2710_v22 = vmul.f32 %v2691_v15, %v4380_v40  ;;  %3640 = vmatprep.subr.mxu0 %v3818_v52 }
 0xb7c   : > { %v3606_v16 = vpop.f32.mrf.mxu1 }
 0xb7d   : > { %v2713_v17 = vmul.f32 %v3606_v16, %v4398_v41  ;;  %v4483_v41 = vld [vmem:[%s4595_s8 + $0x8] sm:$0x3] }
 0xb7e   : > { %v2701_v19 = vpop.f32.mrf.mxu1  ;;  %v2870_v25 = vrot.slane %v4483_v41, %v4104_v7  ;;  %v2898_v7 = vld [vmem:[%s4601_s14 + $0x18] sm:$0xff] }
 0xb7f   : > { %v2712_v20 = vmul.f32 %v2701_v19, %v4392_v60  ;;  %3608 = vmatpush3.msra.mxu1 %v2713_v17 }
 0xb80   : > { %3609 = vmatprep.subr.mxu1 %v3818_v52 }
 0xb81   : > { %3610 = vmatpush3.msra.mxu1 %v2712_v20 }
 0xb82   : > { %3611 = vmatprep.subr.mxu1 %v3818_v52 }
 0xb83   : > { %3612 = vmatpush3.msra.mxu1 %v2711_v21 }
 0xb84   : > { %3613 = vmatprep.subr.mxu1 %v3818_v52 }
 0xb85   : > { %3614 = vmatpush3.msra.mxu1 %v2710_v22 }
 0xb86   : > { %3616 = vmatmul.mubr.msk.f32.vlgmr.msra.gmra.mxu1 %vm862_vm0, %v2714_v23  ;;  %3629 = vmatprep.subr.mxu1 %v3818_v52 }
 0xb87   : > { %3637 = vmatprep.mubr.msk.f32.mxu1 %vm3821_vm2, %v3818_v52  ;;  %3630 = vmatpush3.msra.mxu1 %v2898_v7 }
 0xb88   : > { %3631 = vmatprep.subr.mxu1 %v3818_v52 }
 0xc46   : > { %v2784_v40 = vpop.f32.mrf.mxu1 }
 0xc47   : > { %3627 = vmatmul.mubr.msk.f32.vlgmr.msra.gmra.mxu0 %vm862_vm0, %v2784_v40 }
 0xc48   : > { %v3617_v60 = vpop.f32.mrf.mxu1  ;;  %3656 = vmatprep.mubr.msk.f32.mxu0 %vm3821_vm2, %v3818_v52  ;;  %3641 = vmatpush3.msra.mxu0 %v2987_v30 }
 0xc49   : > { %3642 = vmatprep.subr.mxu0 %v3818_v52 }
 0xc4a   : > { %3643 = vmatpush3.msra.mxu0 %v2986_v14 }
 0xc4b   : > { %3644 = vmatprep.subr.mxu0 %v3818_v52 }
 0xc4c   : > { %3645 = vmatpush3.msra.mxu0 %v2985_v38 }
 0xc4d   : > { %3646 = vmatprep.subr.mxu0 %v3818_v52 }
 0xc4e   : > { %3647 = vmatpush3.msra.mxu0 %v2984_v39 }
 0xc4f   : > { %3648 = vmatprep.subr.mxu0 %v3818_v52 }
 0xc50   : > { %3649 = vmatpush3.msra.mxu0 %v2983_v18 }
 0xc51   : > { %3650 = vmatprep.subr.mxu0 %v3818_v52 }
 0xc52   : > { %3651 = vmatpush3.msra.mxu0 %v2982_v55 }
 0xc53   : > { %3652 = vmatprep.subr.mxu0 %v3818_v52 }
 0xc54   : > { %3653 = vmatpush3.msra.mxu0 %v2981_v6 }
 0xc55   : > { %3654 = vmatprep.subr.mxu0 %v3818_v52 }
 0xc56   : > { %3655 = vmatpush3.msra.mxu0 %v2980_v56 }
 0xd07   : > { %v2862_v27 = vpop.f32.mrf.mxu0 }
 0xd08   : > { %v2866_v62 = vadd.f32 %v2862_v27, %v4301_v57  ;;  %v2897_v57 = vld [vmem:[%s4601_s14 + $0x10] sm:$0xff] }
 0xd09   : > { %v3628_v28 = vpop.f32.mrf.mxu0  ;;  %3632 = vmatpush3.msra.mxu1 %v2897_v57 }
 0xd0a   : > { %v4488_v29 = vadd.f32 %v2870_v25, %v2866_v62  ;;  %3633 = vmatprep.subr.mxu1 %v3818_v52 }
 0xd0b   : > { %3634 = vmatpush3.msra.mxu1 %v2896_v36 }
 0xd0c   : > { %v2872_v31 = vsel %vm862_vm0, %v4488_v29, 0.0  ;;  %3635 = vmatprep.subr.mxu1 %v3818_v52  ;;  %v3066_v52 = vrot.slane %v4483_v41, %v4112_v9 }
 0xd0d   : > { %2873 = vadd.xlane.f32.xlu0 %v2872_v31  ;;  %3636 = vmatpush3.msra.mxu1 %v2895_v37 }
 0xd96   : > { %v2874_v32 = vpop.xlane.xlu0 %2873 }
 0xd97   : > { %v2875_v33 = vmul.f32 0.03125, %v2874_v32 }
 0xd99   : > { %v2876_v34 = vsub.f32 %v4488_v29, %v2875_v33 }
 0xd9b   : > { %v2877_v35 = vmul.f32 %v2876_v34, %v2876_v34 }
 0xd9d   : > { %v2878_v26 = vsel %vm862_vm0, %v2877_v35, 0.0 }
 0xd9e   : > { %2879 = vadd.xlane.f32.xlu1 %v2878_v26 }
 0xe27   : > { %v2880_v11 = vpop.xlane.xlu1 %2879 }
 0xe28   : > { %v2881_v42 = vmul.f32 0.03125, %v2880_v11 }
 0xe2a   : > { %v2882_v43 = vadd.f32 1e-05, %v2881_v42 }
 0xe2c   : > { %3753 = vrsqrt.f32 %v2882_v43 }
 0xe39   : > { %v3754_v47 = vpop.eup %3753 }
 0xe3a   : > { %v2884_v49 = vmul.f32 %v3754_v47, %v2876_v34 }
 0xe3c   : > { %v2889_v51 = vmul.f32 %v2888_v46, %v2884_v49 }
 0xe3e   : > { %v2894_v53 = vadd.f32 %v2893_v50, %v2889_v51 }
 0xe40   : > { %3638 = vmatmul.mubr.msk.f32.vlgmr.msra.gmra.mxu1 %vm862_vm0, %v2894_v53 }
 0xf00   : > { %v2975_v0 = vpop.f32.mrf.mxu1 }
 0xf01   : > { %v2976_v48 = vadd.f32 %v3311_v59, %v2975_v0 }
 0xf02   : > { %v3639_v61 = vpop.f32.mrf.mxu1 }
 0xf03   : > { %v2979_v8 = vmax.f32 %v2976_v48, 0.0 }
 0xf05   : > { %3657 = vmatmul.mubr.msk.f32.vlgmr.msra.gmra.mxu0 %vm2988_vm9, %v2979_v8 }
 0xfc5   : > { %v3058_v1 = vpop.f32.mrf.mxu0 }
 0xfc6   : > { %v3062_v2 = vadd.f32 %v3058_v1, %v4488_v29 }
 0xfc7   : > { %v3658_v63 = vpop.f32.mrf.mxu0 }
 0xfc8   : > { %v3067_v54 = vadd.f32 %v3066_v52, %v3062_v2 }
 0xfca   : > { %3068 = vst.msk [vmem:[%s777_s0] sm:$0xff] %vm862_vm0, %v3067_v54 }
 0xfcb   : > { %3769 = shalt.err (!%p3766_p3)
}
 0xfcc   : > { %s3770_s24 = scalar_lea.hbm %s3081_s1, 128  ;;  %s3774_s2 = scalar_lea.hbm %s4609_s22, 256 }
 0xfcd   : > { %p3771_p4 = scmp.ne.s32.totalorder %s3081_s1, %s3770_s24  ;;  %p3775_p9 = scmp.lt.s32.totalorder %s3081_s1, %s4609_s22 }
 0xfce   : > { %p3776_p10 = scmp.lt.s32.totalorder %s3774_s2, %s3770_s24 }
 0xfcf   : > { %p3772_p7 = pnand %p3771_p4, %p3978_p5 }
 0xfd0   : > { %p3777_p11 = por %p3776_p10, %p3775_p9 }
 0xfd1   : > { %p3773_p8 = pneg %p3772_p7 }
 0xfd3   : > { %p3778_p12 = pnand %p3777_p11, %p3773_p8 }
 0xfd5   : > { %3781 = shalt.err (!%p3778_p12)
}
 0xfd6   : > { %3660 = dma.vmem_to_hbm [thread:$0]  (%p3978_p5), %s3084_s5, 128, %s3081_s1, %s3070_s23  }
 0xfd7 PF: > { %s4642_s29 = sld [smem:[#allocation5_spill]]  ;;  %p3666_p13 = scmp.ge.s32.totalorder %s3816_s30, 2 }
 0xfd9   : > { %p3663_p0 = pnand %p3666_p13, %p3982_p6 }
 0xfdb   : > { %p3664_p1 = pneg %p3663_p0 }
 0xfdd   : > { %s3095_s4 = sand.u32 1, %s4642_s29  }
 0xfde   : > { %s3096_s25 = scalar_lea.sflag [#allocation3], %s3095_s4 }
 0xfdf   : > { %3799 = dma.done.wait (%p3664_p1), %s3096_s25, 128  }
 0xfe0   : > { %3801 = vsyncadd (%p3664_p1), %s3096_s25, 4294967168  ;;  %s4644_s30 = sld [smem:[#allocation7_spill]]  ;;  %s4647_s3 = smov %s3808_s28 }
 0xfe1   : > { %s4645_s10 = sld [smem:[#allocation6_spill]] }
 0xfe2   : > { %s4646_s29 = sld [smem:[#allocation8_spill]] }
 0xfe6   : > { %p32_p2 = scmp.ge.s32.totalorder %s4644_s30, 4  }
 0xfe7   : > { %s4648_s28 = smov %s4645_s10 }
 0xfe8   :  { %34 = sbr.rel (!%p32_p2) target bundleno = 13 (0xd), region = 167 }
 0xfed   :  { %3101 = vsyncpa [#allocation3], 1 }
 0xfee   :  { %3103 = vsyncpa [#allocation3 + $0x1], 1 }

</bundles_post_ra>
